<compile_context>
chip_gen: v7x
topology: tpu7x:2x2x1
jax: 0.10.0
libtpu: 0.0.40
codegen_flags: <defaults>
</compile_context>

<pallas_src>
import functools

import jax
import jax.numpy as jnp
from jax.experimental import pallas as pl
from jax.experimental.pallas import tpu as pltpu


# ----------------------------------------------------------------------------
# Pallas kernel: all layers for one batch element, grid = (B, L).
# Activations [S, E] stay resident in out_ref across the layer axis.
# ----------------------------------------------------------------------------
def fused_layers_kernel(h0_ref, mask_ref, ln_ref, wqkv_ref, bqkv_ref,
                        wo_ref, bo_ref, w1_ref, b1_ref, w2_ref, b2_ref,
                        out_ref, qkv_vmem, ctx_vmem, *, num_heads):
    layer = pl.program_id(1)

    # First layer of this batch element: load embeddings into the carry buffer.
    @pl.when(layer == 0)
    def _init():
        out_ref[...] = h0_ref[...]

    S, E = out_ref.shape
    H = num_heads
    Dh = E // H
    eps = 1e-12
    bf16 = jnp.bfloat16
    f32 = jnp.float32

    def layer_norm(x, w, b):
        # two-pass variance (numerically safe)
        mu = jnp.mean(x, axis=-1, keepdims=True)
        xc = x - mu
        var = jnp.mean(xc * xc, axis=-1, keepdims=True)
        return xc * jax.lax.rsqrt(var + eps) * w + b

    h = out_ref[...]                        # f32 [S, E], resident carry

    ln1_w = ln_ref[0:1, :]
    ln1_b = ln_ref[1:2, :]
    ln2_w = ln_ref[2:3, :]
    ln2_b = ln_ref[3:4, :]

    # ---------------- LayerNorm 1 ----------------------------------------
    hn = layer_norm(h, ln1_w, ln1_b)        # f32 [S, E]
    hn_bf = hn.astype(bf16)                 # cast once, reused below

    # ---------------- joint QKV projection: single [S,E] x [E,3E] --------
    qkv = jnp.dot(hn_bf, wqkv_ref[...],
                  preferred_element_type=f32) + bqkv_ref[...]   # f32 [S, 3E]
    qkv_vmem[...] = qkv

    # ---------------- attention: per-head scores / softmax / PV ----------
    # Query weights/bias were pre-scaled by 1/sqrt(Dh) at pack time.
    attn_mask = mask_ref[...]               # additive causal mask, layer-invariant
    # TODO(synk): for long sequences replace with flash-style K-tiling
    # (online softmax) to bound score memory.
    for hh in range(H):
        qh = qkv_vmem[:, hh * Dh:(hh + 1) * Dh].astype(bf16)            # [S, Dh]
        kh = qkv_vmem[:, E + hh * Dh:E + (hh + 1) * Dh].astype(bf16)
        vh = qkv_vmem[:, 2 * E + hh * Dh:2 * E + (hh + 1) * Dh].astype(bf16)
        s = jnp.einsum('qd,kd->qk', qh, kh,
                       preferred_element_type=f32)                      # [S, S]
        s = s + attn_mask
        m = jnp.max(s, axis=-1, keepdims=True)
        p = jnp.exp(s - m)
        p = p / jnp.sum(p, axis=-1, keepdims=True)
        ctx_h = jnp.dot(p.astype(bf16), vh,
                        preferred_element_type=f32)                     # [S, Dh]
        ctx_vmem[:, hh * Dh:(hh + 1) * Dh] = ctx_h

    # ---------------- output projection (K = E) + residual ---------------
    ctx = ctx_vmem[...].astype(bf16)                                     # [S, E]
    attn = jnp.dot(ctx, wo_ref[...],
                   preferred_element_type=f32) + bo_ref[...]            # [S, E]
    h1 = attn + hn                          # residual adds post-LN1 value (module semantics)

    # ---------------- LayerNorm 2 + FFN + residual ------------------------
    h2 = layer_norm(h1, ln2_w, ln2_b)
    # TODO(synk): at realistic F, tile the FFN over hidden_dim (stream w1/w2 slabs).
    f = jnp.dot(h2.astype(bf16), w1_ref[...],
                preferred_element_type=f32) + b1_ref[...]
    f = jnp.maximum(f, 0.0)
    f = jnp.dot(f.astype(bf16), w2_ref[...],
                preferred_element_type=f32) + b2_ref[...]

    out_ref[...] = f + h2                   # stays resident; HBM writeback when b changes


def transformer_layers(h, attn_mask, packed, *, num_heads):
    """Run all layers in one pallas_call.  h: [B, S, E] f32."""
    B, S, E = h.shape
    L = packed['ln'].shape[0]
    F = packed['w1'].shape[-1]

    kernel = functools.partial(fused_layers_kernel, num_heads=num_heads)
    in_specs = [
        pl.BlockSpec((None, S, E), lambda b, l: (b, 0, 0)),       # h0 (read at l==0)
        pl.BlockSpec((S, S), lambda b, l: (0, 0)),                # additive causal mask
        pl.BlockSpec((None, 4, E), lambda b, l: (l, 0, 0)),       # ln1_w/ln1_b/ln2_w/ln2_b
        pl.BlockSpec((None, E, 3 * E), lambda b, l: (l, 0, 0)),   # w_qkv (bf16, q pre-scaled)
        pl.BlockSpec((None, 1, 3 * E), lambda b, l: (l, 0, 0)),   # b_qkv (f32, lane-dense)
        pl.BlockSpec((None, E, E), lambda b, l: (l, 0, 0)),       # w_out (bf16)
        pl.BlockSpec((None, 1, E), lambda b, l: (l, 0, 0)),       # b_out
        pl.BlockSpec((None, E, F), lambda b, l: (l, 0, 0)),       # w1
        pl.BlockSpec((None, 1, F), lambda b, l: (l, 0, 0)),       # b1
        pl.BlockSpec((None, F, E), lambda b, l: (l, 0, 0)),       # w2
        pl.BlockSpec((None, 1, E), lambda b, l: (l, 0, 0)),       # b2
    ]
    out_specs = pl.BlockSpec((None, S, E), lambda b, l: (b, 0, 0))  # resident carry over l

    return pl.pallas_call(
        kernel,
        grid=(B, L),
        in_specs=in_specs,
        out_specs=out_specs,
        out_shape=jax.ShapeDtypeStruct((B, S, E), jnp.float32),
        scratch_shapes=[pltpu.VMEM((S, 3 * E), jnp.float32),      # qkv slab
                        pltpu.VMEM((S, E), jnp.float32)],         # per-head ctx slab
        compiler_params=pltpu.CompilerParams(
            dimension_semantics=("parallel", "arbitrary"),
            vmem_limit_bytes=48 * 1024 * 1024),
    )(h, attn_mask, packed['ln'], packed['wqkv'], packed['bqkv'], packed['wo'],
      packed['bo'], packed['w1'], packed['b1'], packed['w2'], packed['b2'])


# ----------------------------------------------------------------------------
# Parameter prep: stack per-layer params along a layer axis, fold the softmax
# scale into Wq/bq, pack QKV as one [E, 3E] matrix, cast matmul weights bf16.
# ----------------------------------------------------------------------------
def pack_layer_params(layers, *, num_heads):
    E = layers[0][2].shape[0]
    Dh = E // num_heads
    scale = Dh ** -0.5

    ln_l, wqkv_l, bqkv_l, wo_l, bo_l, w1_l, b1_l, w2_l, b2_l = \
        ([] for _ in range(9))
    for (ln1_w, ln1_b, wq, wk, wv, bq, bk, bv, wo, bo,
         ln2_w, ln2_b, w1, b1, w2, b2) in layers:
        ln_l.append(jnp.concatenate([ln1_w, ln1_b, ln2_w, ln2_b], axis=0))   # [4, E]
        wqkv_l.append(jnp.concatenate([wq * scale, wk, wv], axis=-1))        # [E, 3E]
        bqkv_l.append(jnp.concatenate([bq * scale, bk, bv], axis=-1))        # [1, 3E]
        wo_l.append(wo)                                                      # [E, E]
        bo_l.append(bo)                                                      # [1, E]
        w1_l.append(w1); b1_l.append(b1)
        w2_l.append(w2); b2_l.append(b2)

    f32, bf16 = jnp.float32, jnp.bfloat16
    return {
        'ln':   jnp.stack(ln_l).astype(f32),      # [L, 4, E]
        'wqkv': jnp.stack(wqkv_l).astype(bf16),   # [L, E, 3E]
        'bqkv': jnp.stack(bqkv_l).astype(f32),    # [L, 1, 3E]
        'wo':   jnp.stack(wo_l).astype(bf16),     # [L, E, E]
        'bo':   jnp.stack(bo_l).astype(f32),      # [L, 1, E]
        'w1':   jnp.stack(w1_l).astype(bf16),     # [L, E, F]
        'b1':   jnp.stack(b1_l).astype(f32),      # [L, 1, F]
        'w2':   jnp.stack(w2_l).astype(bf16),     # [L, F, E]
        'b2':   jnp.stack(b2_l).astype(f32),      # [L, 1, E]
    }


# ----------------------------------------------------------------------------
# Full forward (embeddings are plain-JAX glue; all layers = ONE Pallas call)
# ----------------------------------------------------------------------------
def transformer_forward(tokens_sb, tok_emb, pos_emb, packed, *, num_heads, causal):
    """tokens_sb: [seq, batch] int32 -> [seq, batch, embed] float32."""
    S, B = tokens_sb.shape
    # TODO(synk): embedding lookup is a gather; kept in plain JAX (glue).
    h = tok_emb[tokens_sb]                                   # [S, B, E]
    h = h + pos_emb[jnp.arange(S)][:, None, :]               # positions broadcast over batch
    # dropout: identity (eval mode)
    h = jnp.transpose(h, (1, 0, 2))                          # kernel layout [B, S, E]
    if causal:
        attn_mask = jnp.triu(jnp.full((S, S), -1e30, jnp.float32), 1)
    else:
        attn_mask = jnp.zeros((S, S), jnp.float32)
    # TODO(synk): padding_mask (key_padding_mask) is not supported.
    h = transformer_layers(h, attn_mask, packed, num_heads=num_heads)
    return jnp.transpose(h, (1, 0, 2))                       # back to [S, B, E]


# ----------------------------------------------------------------------------
# Pure-JAX reference (module semantics; mirrors the kernel's mixed-precision
# matmul policy: bf16 operands, f32 accumulation) for correctness checking.
# ----------------------------------------------------------------------------
def reference_forward(tokens_sb, params, *, num_heads, causal):
    S, B = tokens_sb.shape
    h = params['tok_emb'][tokens_sb] + params['pos_emb'][jnp.arange(S)][:, None, :]
    h = jnp.transpose(h, (1, 0, 2))                          # [B, S, E]
    E = h.shape[-1]
    Dh = E // num_heads
    scale = Dh ** -0.5
    bf16 = jnp.bfloat16

    def mm(x, w):
        return jnp.dot(x.astype(bf16), w.astype(bf16),
                       preferred_element_type=jnp.float32)

    def ln(x, w, b):
        mu = jnp.mean(x, -1, keepdims=True)
        var = jnp.mean((x - mu) ** 2, -1, keepdims=True)
        return (x - mu) / jnp.sqrt(var + 1e-12) * w + b

    mask = jnp.triu(jnp.ones((S, S), bool), 1)
    for (ln1_w, ln1_b, wq, wk, wv, bq, bk, bv, wo, bo,
         ln2_w, ln2_b, w1, b1, w2, b2) in params['layers']:
        hn = ln(h, ln1_w, ln1_b)

        def split(x):
            return x.reshape(B, S, num_heads, Dh).transpose(0, 2, 1, 3)

        q = split(mm(hn, wq * scale) + bq * scale)
        k = split(mm(hn, wk) + bk)
        v = split(mm(hn, wv) + bv)
        s = jnp.einsum('bhqd,bhkd->bhqk', q.astype(bf16), k.astype(bf16),
                       preferred_element_type=jnp.float32)
        if causal:
            s = jnp.where(mask[None, None], -jnp.inf, s)
        p = jax.nn.softmax(s, axis=-1)
        ctx = jnp.einsum('bhqk,bhkd->bhqd', p.astype(bf16), v.astype(bf16),
                         preferred_element_type=jnp.float32)
        ctx = ctx.transpose(0, 2, 1, 3).reshape(B, S, E)
        h = mm(ctx, wo) + bo + hn
        h2 = ln(h, ln2_w, ln2_b)
        f = mm(jnp.maximum(mm(h2, w1) + b1, 0.0), w2) + b2
        h = f + h2
    return jnp.transpose(h, (1, 0, 2))


# ----------------------------------------------------------------------------
# Deterministic parameter construction
# ----------------------------------------------------------------------------
def init_params(key, *, vocab, max_pos, embed_dim, hidden_dim, num_layers):
    E, H = embed_dim, hidden_dim
    keys = jax.random.split(key, 2 + num_layers)
    tok_emb = (jax.random.normal(keys[0], (vocab, E)) * 0.02).astype(jnp.float32)
    pos_emb = (jax.random.normal(keys[1], (max_pos, E)) * 0.02).astype(jnp.float32)
    layers = []
    for l in range(num_layers):
        k = jax.random.split(keys[2 + l], 6)
        layers.append((
            jnp.ones((1, E), jnp.float32),                     # ln1_w
            jnp.zeros((1, E), jnp.float32),                    # ln1_b
            (jax.random.normal(k[0], (E, E)) * 0.05).astype(jnp.float32),  # wq (pre-transposed)
            (jax.random.normal(k[1], (E, E)) * 0.05).astype(jnp.float32),  # wk
            (jax.random.normal(k[2], (E, E)) * 0.05).astype(jnp.float32),  # wv
            jnp.zeros((1, E), jnp.float32),                    # bq
            jnp.zeros((1, E), jnp.float32),                    # bk
            jnp.zeros((1, E), jnp.float32),                    # bv
            (jax.random.normal(k[3], (E, E)) * 0.05).astype(jnp.float32),  # wo
            jnp.zeros((1, E), jnp.float32),                    # bo
            jnp.ones((1, E), jnp.float32),                     # ln2_w
            jnp.zeros((1, E), jnp.float32),                    # ln2_b
            (jax.random.normal(k[4], (E, H)) * 0.05).astype(jnp.float32),  # w1
            jnp.zeros((1, H), jnp.float32),                    # b1
            (jax.random.normal(k[5], (H, E)) * 0.05).astype(jnp.float32),  # w2
            jnp.zeros((1, E), jnp.float32),                    # b2
        ))
    return {'tok_emb': tok_emb, 'pos_emb': pos_emb, 'layers': layers}


if __name__ == "__main__":
    # module hyper-parameters (small, consistent with the forward pass)
    embed_dim = 32
    hidden_dim = 64
    num_embeddings = 100
    num_max_positions = 16
    num_heads = 4
    num_layers = 2
    causal = True
    # dropout = 0.0 (eval / identity)

    seq_len, batch = 8, 2

    key = jax.random.PRNGKey(0)
    k_tok, k_par = jax.random.split(key)
    tokens = jax.random.randint(k_tok, (seq_len, batch), 0, num_embeddings,
                                dtype=jnp.int32)             # x: [seq, batch]

    params = init_params(k_par, vocab=num_embeddings, max_pos=num_max_positions,
                         embed_dim=embed_dim, hidden_dim=hidden_dim,
                         num_layers=num_layers)
    packed = pack_layer_params(params['layers'], num_heads=num_heads)

    out = transformer_forward(tokens, params['tok_emb'], params['pos_emb'],
                              packed, num_heads=num_heads, causal=causal)
    out = jax.block_until_ready(out)

    ref = reference_forward(tokens, params, num_heads=num_heads, causal=causal)
    assert out.shape == (seq_len, batch, embed_dim)
    assert jnp.allclose(out, ref, atol=1e-2, rtol=1e-2), "mismatch vs reference"

    print("KERNEL_OK")
</pallas_src>

<mosaic_0001>
module attributes {stable_mosaic.version = 11 : i64} {
  func.func @fused_layers_kernel(%arg0: i32, %arg1: i32, %arg2: memref<1x8x32xf32, #tpu.memory_space<vmem>>, %arg3: memref<8x8xf32, #tpu.memory_space<vmem>>, %arg4: memref<1x4x32xf32, #tpu.memory_space<vmem>>, %arg5: memref<1x32x96xbf16, #tpu.memory_space<vmem>>, %arg6: memref<1x1x96xf32, #tpu.memory_space<vmem>>, %arg7: memref<1x32x32xbf16, #tpu.memory_space<vmem>>, %arg8: memref<1x1x32xf32, #tpu.memory_space<vmem>>, %arg9: memref<1x32x64xbf16, #tpu.memory_space<vmem>>, %arg10: memref<1x1x64xf32, #tpu.memory_space<vmem>>, %arg11: memref<1x64x32xbf16, #tpu.memory_space<vmem>>, %arg12: memref<1x1x32xf32, #tpu.memory_space<vmem>>, %arg13: memref<1x8x32xf32, #tpu.memory_space<vmem>>, %arg14: memref<8x96xf32, #tpu.memory_space<vmem>>, %arg15: memref<8x32xf32, #tpu.memory_space<vmem>>) attributes {dimension_semantics = [#tpu.dimension_semantics<parallel>, #tpu.dimension_semantics<arbitrary>], iteration_bounds = array<i64: 2, 2>, scalar_prefetch = 0 : i64, scratch_operands = 2 : i64, tpu.core_type = #tpu.core_type<tc>, window_params = [{transform_indices = @transform_0, window_bounds = array<i64: 1, 8, 32>}, {pipeline_mode = #tpu.pipeline_mode<synchronous>, transform_indices = @transform_1, window_bounds = array<i64: 8, 8>}, {transform_indices = @transform_2, window_bounds = array<i64: 1, 4, 32>}, {transform_indices = @transform_3, window_bounds = array<i64: 1, 32, 96>}, {transform_indices = @transform_4, window_bounds = array<i64: 1, 1, 96>}, {transform_indices = @transform_5, window_bounds = array<i64: 1, 32, 32>}, {transform_indices = @transform_6, window_bounds = array<i64: 1, 1, 32>}, {transform_indices = @transform_7, window_bounds = array<i64: 1, 32, 64>}, {transform_indices = @transform_8, window_bounds = array<i64: 1, 1, 64>}, {transform_indices = @transform_9, window_bounds = array<i64: 1, 64, 32>}, {transform_indices = @transform_10, window_bounds = array<i64: 1, 1, 32>}, {transform_indices = @transform_11, window_bounds = array<i64: 1, 8, 32>}]} {
    %c0_i32 = arith.constant 0 : i32
    %0 = arith.cmpi eq, %arg1, %c0_i32 : i32
    %1 = arith.extui %0 : i1 to i32
    %c0_i32_0 = arith.constant 0 : i32
    %2 = arith.cmpi ne, %1, %c0_i32_0 : i32
    scf.if %2 {
      %c0_96 = arith.constant 0 : index
      %c0_97 = arith.constant 0 : index
      %c0_98 = arith.constant 0 : index
      %175 = vector.load %arg2[%c0_96, %c0_97, %c0_98] : memref<1x8x32xf32, #tpu.memory_space<vmem>>, vector<1x8x32xf32>
      %176 = vector.shape_cast %175 : vector<1x8x32xf32> to vector<8x32xf32>
      %c0_99 = arith.constant 0 : index
      %c0_100 = arith.constant 0 : index
      %c0_101 = arith.constant 0 : index
      %177 = vector.load %arg13[%c0_99, %c0_100, %c0_101] : memref<1x8x32xf32, #tpu.memory_space<vmem>>, vector<1x8x32xf32>
      %178 = vector.shape_cast %177 : vector<1x8x32xf32> to vector<8x32xf32>
      %179 = vector.shape_cast %176 : vector<8x32xf32> to vector<1x8x32xf32>
      tpu.vector_store %arg13[%c0_99, %c0_100, %c0_101], %179 {strides = array<i32>} : memref<1x8x32xf32, #tpu.memory_space<vmem>>, vector<1x8x32xf32>,
    } else {
    }
    %c0 = arith.constant 0 : index
    %c0_1 = arith.constant 0 : index
    %c0_2 = arith.constant 0 : index
    %3 = vector.load %arg13[%c0, %c0_1, %c0_2] : memref<1x8x32xf32, #tpu.memory_space<vmem>>, vector<1x8x32xf32>
    %4 = vector.shape_cast %3 : vector<1x8x32xf32> to vector<8x32xf32>
    %c0_3 = arith.constant 0 : index
    %c0_4 = arith.constant 0 : index
    %c0_5 = arith.constant 0 : index
    %5 = vector.load %arg4[%c0_3, %c0_4, %c0_5] : memref<1x4x32xf32, #tpu.memory_space<vmem>>, vector<1x1x32xf32>
    %6 = vector.shape_cast %5 : vector<1x1x32xf32> to vector<1x32xf32>
    %c0_6 = arith.constant 0 : index
    %c1 = arith.constant 1 : index
    %c0_7 = arith.constant 0 : index
    %7 = vector.load %arg4[%c0_6, %c1, %c0_7] : memref<1x4x32xf32, #tpu.memory_space<vmem>>, vector<1x1x32xf32>
    %8 = vector.shape_cast %7 : vector<1x1x32xf32> to vector<1x32xf32>
    %c0_8 = arith.constant 0 : index
    %c2 = arith.constant 2 : index
    %c0_9 = arith.constant 0 : index
    %9 = vector.load %arg4[%c0_8, %c2, %c0_9] : memref<1x4x32xf32, #tpu.memory_space<vmem>>, vector<1x1x32xf32>
    %10 = vector.shape_cast %9 : vector<1x1x32xf32> to vector<1x32xf32>
    %c0_10 = arith.constant 0 : index
    %c3 = arith.constant 3 : index
    %c0_11 = arith.constant 0 : index
    %11 = vector.load %arg4[%c0_10, %c3, %c0_11] : memref<1x4x32xf32, #tpu.memory_space<vmem>>, vector<1x1x32xf32>
    %12 = vector.shape_cast %11 : vector<1x1x32xf32> to vector<1x32xf32>
    %cst = arith.constant dense<0.000000e+00> : vector<8xf32>
    %13 = vector.multi_reduction <add>, %4, %cst [1] : vector<8x32xf32> to vector<8xf32>
    %14 = vector.shape_cast %13 : vector<8xf32> to vector<8x1xf32>
    %cst_12 = arith.constant 3.200000e+01 : f32
    %15 = vector.broadcast %cst_12 : f32 to vector<8x1xf32>
    %16 = arith.divf %14, %15 : vector<8x1xf32>
    %17 = vector.broadcast %16 : vector<8x1xf32> to vector<8x32xf32>
    %18 = arith.subf %4, %17 : vector<8x32xf32>
    %19 = arith.mulf %18, %18 : vector<8x32xf32>
    %cst_13 = arith.constant dense<0.000000e+00> : vector<8xf32>
    %20 = vector.multi_reduction <add>, %19, %cst_13 [1] : vector<8x32xf32> to vector<8xf32>
    %21 = vector.shape_cast %20 : vector<8xf32> to vector<8x1xf32>
    %cst_14 = arith.constant 3.200000e+01 : f32
    %22 = vector.broadcast %cst_14 : f32 to vector<8x1xf32>
    %23 = arith.divf %21, %22 : vector<8x1xf32>
    %cst_15 = arith.constant 9.99999996E-13 : f32
    %24 = vector.broadcast %cst_15 : f32 to vector<8x1xf32>
    %25 = arith.addf %23, %24 : vector<8x1xf32>
    %26 = math.rsqrt %25 : vector<8x1xf32>
    %27 = vector.broadcast %26 : vector<8x1xf32> to vector<8x32xf32>
    %28 = arith.mulf %18, %27 : vector<8x32xf32>
    %29 = vector.broadcast %6 : vector<1x32xf32> to vector<8x32xf32>
    %30 = arith.mulf %28, %29 : vector<8x32xf32>
    %31 = vector.broadcast %8 : vector<1x32xf32> to vector<8x32xf32>
    %32 = arith.addf %30, %31 : vector<8x32xf32>
    %33 = arith.truncf %32 : vector<8x32xf32> to vector<8x32xbf16>
    %c0_16 = arith.constant 0 : index
    %c0_17 = arith.constant 0 : index
    %c0_18 = arith.constant 0 : index
    %34 = vector.load %arg5[%c0_16, %c0_17, %c0_18] : memref<1x32x96xbf16, #tpu.memory_space<vmem>>, vector<1x32x96xbf16>
    %35 = vector.shape_cast %34 : vector<1x32x96xbf16> to vector<32x96xbf16>
    %cst_19 = arith.constant dense<0.000000e+00> : vector<8x96xf32>
    %36 = tpu.matmul %33, %35, %cst_19 {dimension_numbers = #tpu.dot_dimension_numbers<[1], [0], [0], [1], [0, 0, 1, 1], [], []>} : vector<8x32xbf16>, vector<32x96xbf16>, vector<8x96xf32> -> vector<8x96xf32>
    %c0_20 = arith.constant 0 : index
    %c0_21 = arith.constant 0 : index
    %c0_22 = arith.constant 0 : index
    %37 = vector.load %arg6[%c0_20, %c0_21, %c0_22] : memref<1x1x96xf32, #tpu.memory_space<vmem>>, vector<1x1x96xf32>
    %38 = vector.shape_cast %37 : vector<1x1x96xf32> to vector<1x96xf32>
    %39 = vector.broadcast %38 : vector<1x96xf32> to vector<8x96xf32>
    %40 = arith.addf %36, %39 : vector<8x96xf32>
    %c0_23 = arith.constant 0 : index
    %c0_24 = arith.constant 0 : index
    %41 = vector.load %arg14[%c0_23, %c0_24] : memref<8x96xf32, #tpu.memory_space<vmem>>, vector<8x96xf32>
    tpu.vector_store %arg14[%c0_23, %c0_24], %40 {strides = array<i32>} : memref<8x96xf32, #tpu.memory_space<vmem>>, vector<8x96xf32>,
    %c0_25 = arith.constant 0 : index
    %c0_26 = arith.constant 0 : index
    %42 = vector.load %arg3[%c0_25, %c0_26] : memref<8x8xf32, #tpu.memory_space<vmem>>, vector<8x8xf32>
    %c0_27 = arith.constant 0 : index
    %c0_28 = arith.constant 0 : index
    %43 = vector.load %arg14[%c0_27, %c0_28] : memref<8x96xf32, #tpu.memory_space<vmem>>, vector<8x8xf32>
    %44 = arith.truncf %43 : vector<8x8xf32> to vector<8x8xbf16>
    %c0_29 = arith.constant 0 : index
    %c32 = arith.constant 32 : index
    %45 = vector.load %arg14[%c0_29, %c32] : memref<8x96xf32, #tpu.memory_space<vmem>>, vector<8x8xf32>
    %46 = arith.truncf %45 : vector<8x8xf32> to vector<8x8xbf16>
    %c0_30 = arith.constant 0 : index
    %c64 = arith.constant 64 : index
    %47 = vector.load %arg14[%c0_30, %c64] : memref<8x96xf32, #tpu.memory_space<vmem>>, vector<8x8xf32>
    %48 = arith.truncf %47 : vector<8x8xf32> to vector<8x8xbf16>
    "tpu.trace_start"() <{level = 10 : i32, message = "qd,kd->qk"}> : () -> ()
    %cst_31 = arith.constant dense<0.000000e+00> : vector<8x8xf32>
    %49 = tpu.matmul %44, %46, %cst_31 {dimension_numbers = #tpu.dot_dimension_numbers<[1], [1], [0], [0], [0, 0, 1, 0], [], []>} : vector<8x8xbf16>, vector<8x8xbf16>, vector<8x8xf32> -> vector<8x8xf32>
    "tpu.trace_stop"() : () -> ()
    %50 = arith.addf %49, %42 : vector<8x8xf32>
    %cst_32 = arith.constant dense<0xFF800000> : vector<8xf32>
    %51 = vector.multi_reduction <maximumf>, %50, %cst_32 [1] : vector<8x8xf32> to vector<8xf32>
    %52 = vector.shape_cast %51 : vector<8xf32> to vector<8x1xf32>
    %53 = vector.broadcast %52 : vector<8x1xf32> to vector<8x8xf32>
    %54 = arith.subf %50, %53 : vector<8x8xf32>
    %55 = math.exp %54 : vector<8x8xf32>
    %cst_33 = arith.constant dense<0.000000e+00> : vector<8xf32>
    %56 = vector.multi_reduction <add>, %55, %cst_33 [1] : vector<8x8xf32> to vector<8xf32>
    %57 = vector.shape_cast %56 : vector<8xf32> to vector<8x1xf32>
    %58 = vector.broadcast %57 : vector<8x1xf32> to vector<8x8xf32>
    %59 = arith.divf %55, %58 : vector<8x8xf32>
    %60 = arith.truncf %59 : vector<8x8xf32> to vector<8x8xbf16>
    %cst_34 = arith.constant dense<0.000000e+00> : vector<8x8xf32>
    %61 = tpu.matmul %60, %48, %cst_34 {dimension_numbers = #tpu.dot_dimension_numbers<[1], [0], [0], [1], [0, 0, 1, 1], [], []>} : vector<8x8xbf16>, vector<8x8xbf16>, vector<8x8xf32> -> vector<8x8xf32>
    %c0_35 = arith.constant 0 : index
    %c0_36 = arith.constant 0 : index
    %62 = vector.load %arg15[%c0_35, %c0_36] : memref<8x32xf32, #tpu.memory_space<vmem>>, vector<8x8xf32>
    tpu.vector_store %arg15[%c0_35, %c0_36], %61 {strides = array<i32>} : memref<8x32xf32, #tpu.memory_space<vmem>>, vector<8x8xf32>,
    %c0_37 = arith.constant 0 : index
    %c8 = arith.constant 8 : index
    %63 = vector.load %arg14[%c0_37, %c8] : memref<8x96xf32, #tpu.memory_space<vmem>>, vector<8x8xf32>
    %64 = arith.truncf %63 : vector<8x8xf32> to vector<8x8xbf16>
    %c0_38 = arith.constant 0 : index
    %c40 = arith.constant 40 : index
    %65 = vector.load %arg14[%c0_38, %c40] : memref<8x96xf32, #tpu.memory_space<vmem>>, vector<8x8xf32>
    %66 = arith.truncf %65 : vector<8x8xf32> to vector<8x8xbf16>
    %c0_39 = arith.constant 0 : index
    %c72 = arith.constant 72 : index
    %67 = vector.load %arg14[%c0_39, %c72] : memref<8x96xf32, #tpu.memory_space<vmem>>, vector<8x8xf32>
    %68 = arith.truncf %67 : vector<8x8xf32> to vector<8x8xbf16>
    "tpu.trace_start"() <{level = 10 : i32, message = "qd,kd->qk"}> : () -> ()
    %cst_40 = arith.constant dense<0.000000e+00> : vector<8x8xf32>
    %69 = tpu.matmul %64, %66, %cst_40 {dimension_numbers = #tpu.dot_dimension_numbers<[1], [1], [0], [0], [0, 0, 1, 0], [], []>} : vector<8x8xbf16>, vector<8x8xbf16>, vector<8x8xf32> -> vector<8x8xf32>
    "tpu.trace_stop"() : () -> ()
    %70 = arith.addf %69, %42 : vector<8x8xf32>
    %cst_41 = arith.constant dense<0xFF800000> : vector<8xf32>
    %71 = vector.multi_reduction <maximumf>, %70, %cst_41 [1] : vector<8x8xf32> to vector<8xf32>
    %72 = vector.shape_cast %71 : vector<8xf32> to vector<8x1xf32>
    %73 = vector.broadcast %72 : vector<8x1xf32> to vector<8x8xf32>
    %74 = arith.subf %70, %73 : vector<8x8xf32>
    %75 = math.exp %74 : vector<8x8xf32>
    %cst_42 = arith.constant dense<0.000000e+00> : vector<8xf32>
    %76 = vector.multi_reduction <add>, %75, %cst_42 [1] : vector<8x8xf32> to vector<8xf32>
    %77 = vector.shape_cast %76 : vector<8xf32> to vector<8x1xf32>
    %78 = vector.broadcast %77 : vector<8x1xf32> to vector<8x8xf32>
    %79 = arith.divf %75, %78 : vector<8x8xf32>
    %80 = arith.truncf %79 : vector<8x8xf32> to vector<8x8xbf16>
    %cst_43 = arith.constant dense<0.000000e+00> : vector<8x8xf32>
    %81 = tpu.matmul %80, %68, %cst_43 {dimension_numbers = #tpu.dot_dimension_numbers<[1], [0], [0], [1], [0, 0, 1, 1], [], []>} : vector<8x8xbf16>, vector<8x8xbf16>, vector<8x8xf32> -> vector<8x8xf32>
    %c0_44 = arith.constant 0 : index
    %c8_45 = arith.constant 8 : index
    %82 = vector.load %arg15[%c0_44, %c8_45] : memref<8x32xf32, #tpu.memory_space<vmem>>, vector<8x8xf32>
    tpu.vector_store %arg15[%c0_44, %c8_45], %81 {strides = array<i32>} : memref<8x32xf32, #tpu.memory_space<vmem>>, vector<8x8xf32>,
    %c0_46 = arith.constant 0 : index
    %c16 = arith.constant 16 : index
    %83 = vector.load %arg14[%c0_46, %c16] : memref<8x96xf32, #tpu.memory_space<vmem>>, vector<8x8xf32>
    %84 = arith.truncf %83 : vector<8x8xf32> to vector<8x8xbf16>
    %c0_47 = arith.constant 0 : index
    %c48 = arith.constant 48 : index
    %85 = vector.load %arg14[%c0_47, %c48] : memref<8x96xf32, #tpu.memory_space<vmem>>, vector<8x8xf32>
    %86 = arith.truncf %85 : vector<8x8xf32> to vector<8x8xbf16>
    %c0_48 = arith.constant 0 : index
    %c80 = arith.constant 80 : index
    %87 = vector.load %arg14[%c0_48, %c80] : memref<8x96xf32, #tpu.memory_space<vmem>>, vector<8x8xf32>
    %88 = arith.truncf %87 : vector<8x8xf32> to vector<8x8xbf16>
    "tpu.trace_start"() <{level = 10 : i32, message = "qd,kd->qk"}> : () -> ()
    %cst_49 = arith.constant dense<0.000000e+00> : vector<8x8xf32>
    %89 = tpu.matmul %84, %86, %cst_49 {dimension_numbers = #tpu.dot_dimension_numbers<[1], [1], [0], [0], [0, 0, 1, 0], [], []>} : vector<8x8xbf16>, vector<8x8xbf16>, vector<8x8xf32> -> vector<8x8xf32>
    "tpu.trace_stop"() : () -> ()
    %90 = arith.addf %89, %42 : vector<8x8xf32>
    %cst_50 = arith.constant dense<0xFF800000> : vector<8xf32>
    %91 = vector.multi_reduction <maximumf>, %90, %cst_50 [1] : vector<8x8xf32> to vector<8xf32>
    %92 = vector.shape_cast %91 : vector<8xf32> to vector<8x1xf32>
    %93 = vector.broadcast %92 : vector<8x1xf32> to vector<8x8xf32>
    %94 = arith.subf %90, %93 : vector<8x8xf32>
    %95 = math.exp %94 : vector<8x8xf32>
    %cst_51 = arith.constant dense<0.000000e+00> : vector<8xf32>
    %96 = vector.multi_reduction <add>, %95, %cst_51 [1] : vector<8x8xf32> to vector<8xf32>
    %97 = vector.shape_cast %96 : vector<8xf32> to vector<8x1xf32>
    %98 = vector.broadcast %97 : vector<8x1xf32> to vector<8x8xf32>
    %99 = arith.divf %95, %98 : vector<8x8xf32>
    %100 = arith.truncf %99 : vector<8x8xf32> to vector<8x8xbf16>
    %cst_52 = arith.constant dense<0.000000e+00> : vector<8x8xf32>
    %101 = tpu.matmul %100, %88, %cst_52 {dimension_numbers = #tpu.dot_dimension_numbers<[1], [0], [0], [1], [0, 0, 1, 1], [], []>} : vector<8x8xbf16>, vector<8x8xbf16>, vector<8x8xf32> -> vector<8x8xf32>
    %c0_53 = arith.constant 0 : index
    %c16_54 = arith.constant 16 : index
    %102 = vector.load %arg15[%c0_53, %c16_54] : memref<8x32xf32, #tpu.memory_space<vmem>>, vector<8x8xf32>
    tpu.vector_store %arg15[%c0_53, %c16_54], %101 {strides = array<i32>} : memref<8x32xf32, #tpu.memory_space<vmem>>, vector<8x8xf32>,
    %c0_55 = arith.constant 0 : index
    %c24 = arith.constant 24 : index
    %103 = vector.load %arg14[%c0_55, %c24] : memref<8x96xf32, #tpu.memory_space<vmem>>, vector<8x8xf32>
    %104 = arith.truncf %103 : vector<8x8xf32> to vector<8x8xbf16>
    %c0_56 = arith.constant 0 : index
    %c56 = arith.constant 56 : index
    %105 = vector.load %arg14[%c0_56, %c56] : memref<8x96xf32, #tpu.memory_space<vmem>>, vector<8x8xf32>
    %106 = arith.truncf %105 : vector<8x8xf32> to vector<8x8xbf16>
    %c0_57 = arith.constant 0 : index
    %c88 = arith.constant 88 : index
    %107 = vector.load %arg14[%c0_57, %c88] : memref<8x96xf32, #tpu.memory_space<vmem>>, vector<8x8xf32>
    %108 = arith.truncf %107 : vector<8x8xf32> to vector<8x8xbf16>
    "tpu.trace_start"() <{level = 10 : i32, message = "qd,kd->qk"}> : () -> ()
    %cst_58 = arith.constant dense<0.000000e+00> : vector<8x8xf32>
    %109 = tpu.matmul %104, %106, %cst_58 {dimension_numbers = #tpu.dot_dimension_numbers<[1], [1], [0], [0], [0, 0, 1, 0], [], []>} : vector<8x8xbf16>, vector<8x8xbf16>, vector<8x8xf32> -> vector<8x8xf32>
    "tpu.trace_stop"() : () -> ()
    %110 = arith.addf %109, %42 : vector<8x8xf32>
    %cst_59 = arith.constant dense<0xFF800000> : vector<8xf32>
    %111 = vector.multi_reduction <maximumf>, %110, %cst_59 [1] : vector<8x8xf32> to vector<8xf32>
    %112 = vector.shape_cast %111 : vector<8xf32> to vector<8x1xf32>
    %113 = vector.broadcast %112 : vector<8x1xf32> to vector<8x8xf32>
    %114 = arith.subf %110, %113 : vector<8x8xf32>
    %115 = math.exp %114 : vector<8x8xf32>
    %cst_60 = arith.constant dense<0.000000e+00> : vector<8xf32>
    %116 = vector.multi_reduction <add>, %115, %cst_60 [1] : vector<8x8xf32> to vector<8xf32>
    %117 = vector.shape_cast %116 : vector<8xf32> to vector<8x1xf32>
    %118 = vector.broadcast %117 : vector<8x1xf32> to vector<8x8xf32>
    %119 = arith.divf %115, %118 : vector<8x8xf32>
    %120 = arith.truncf %119 : vector<8x8xf32> to vector<8x8xbf16>
    %cst_61 = arith.constant dense<0.000000e+00> : vector<8x8xf32>
    %121 = tpu.matmul %120, %108, %cst_61 {dimension_numbers = #tpu.dot_dimension_numbers<[1], [0], [0], [1], [0, 0, 1, 1], [], []>} : vector<8x8xbf16>, vector<8x8xbf16>, vector<8x8xf32> -> vector<8x8xf32>
    %c0_62 = arith.constant 0 : index
    %c24_63 = arith.constant 24 : index
    %122 = vector.load %arg15[%c0_62, %c24_63] : memref<8x32xf32, #tpu.memory_space<vmem>>, vector<8x8xf32>
    tpu.vector_store %arg15[%c0_62, %c24_63], %121 {strides = array<i32>} : memref<8x32xf32, #tpu.memory_space<vmem>>, vector<8x8xf32>,
    %c0_64 = arith.constant 0 : index
    %c0_65 = arith.constant 0 : index
    %123 = vector.load %arg15[%c0_64, %c0_65] : memref<8x32xf32, #tpu.memory_space<vmem>>, vector<8x32xf32>
    %124 = arith.truncf %123 : vector<8x32xf32> to vector<8x32xbf16>
    %c0_66 = arith.constant 0 : index
    %c0_67 = arith.constant 0 : index
    %c0_68 = arith.constant 0 : index
    %125 = vector.load %arg7[%c0_66, %c0_67, %c0_68] : memref<1x32x32xbf16, #tpu.memory_space<vmem>>, vector<1x32x32xbf16>
    %126 = vector.shape_cast %125 : vector<1x32x32xbf16> to vector<32x32xbf16>
    %cst_69 = arith.constant dense<0.000000e+00> : vector<8x32xf32>
    %127 = tpu.matmul %124, %126, %cst_69 {dimension_numbers = #tpu.dot_dimension_numbers<[1], [0], [0], [1], [0, 0, 1, 1], [], []>} : vector<8x32xbf16>, vector<32x32xbf16>, vector<8x32xf32> -> vector<8x32xf32>
    %c0_70 = arith.constant 0 : index
    %c0_71 = arith.constant 0 : index
    %c0_72 = arith.constant 0 : index
    %128 = vector.load %arg8[%c0_70, %c0_71, %c0_72] : memref<1x1x32xf32, #tpu.memory_space<vmem>>, vector<1x1x32xf32>
    %129 = vector.shape_cast %128 : vector<1x1x32xf32> to vector<1x32xf32>
    %130 = vector.broadcast %129 : vector<1x32xf32> to vector<8x32xf32>
    %131 = arith.addf %127, %130 : vector<8x32xf32>
    %132 = arith.addf %131, %32 : vector<8x32xf32>
    %cst_73 = arith.constant dense<0.000000e+00> : vector<8xf32>
    %133 = vector.multi_reduction <add>, %132, %cst_73 [1] : vector<8x32xf32> to vector<8xf32>
    %134 = vector.shape_cast %133 : vector<8xf32> to vector<8x1xf32>
    %cst_74 = arith.constant 3.200000e+01 : f32
    %135 = vector.broadcast %cst_74 : f32 to vector<8x1xf32>
    %136 = arith.divf %134, %135 : vector<8x1xf32>
    %137 = vector.broadcast %136 : vector<8x1xf32> to vector<8x32xf32>
    %138 = arith.subf %132, %137 : vector<8x32xf32>
    %139 = arith.mulf %138, %138 : vector<8x32xf32>
    %cst_75 = arith.constant dense<0.000000e+00> : vector<8xf32>
    %140 = vector.multi_reduction <add>, %139, %cst_75 [1] : vector<8x32xf32> to vector<8xf32>
    %141 = vector.shape_cast %140 : vector<8xf32> to vector<8x1xf32>
    %cst_76 = arith.constant 3.200000e+01 : f32
    %142 = vector.broadcast %cst_76 : f32 to vector<8x1xf32>
    %143 = arith.divf %141, %142 : vector<8x1xf32>
    %cst_77 = arith.constant 9.99999996E-13 : f32
    %144 = vector.broadcast %cst_77 : f32 to vector<8x1xf32>
    %145 = arith.addf %143, %144 : vector<8x1xf32>
    %146 = math.rsqrt %145 : vector<8x1xf32>
    %147 = vector.broadcast %146 : vector<8x1xf32> to vector<8x32xf32>
    %148 = arith.mulf %138, %147 : vector<8x32xf32>
    %149 = vector.broadcast %10 : vector<1x32xf32> to vector<8x32xf32>
    %150 = arith.mulf %148, %149 : vector<8x32xf32>
    %151 = vector.broadcast %12 : vector<1x32xf32> to vector<8x32xf32>
    %152 = arith.addf %150, %151 : vector<8x32xf32>
    %153 = arith.truncf %152 : vector<8x32xf32> to vector<8x32xbf16>
    %c0_78 = arith.constant 0 : index
    %c0_79 = arith.constant 0 : index
    %c0_80 = arith.constant 0 : index
    %154 = vector.load %arg9[%c0_78, %c0_79, %c0_80] : memref<1x32x64xbf16, #tpu.memory_space<vmem>>, vector<1x32x64xbf16>
    %155 = vector.shape_cast %154 : vector<1x32x64xbf16> to vector<32x64xbf16>
    %cst_81 = arith.constant dense<0.000000e+00> : vector<8x64xf32>
    %156 = tpu.matmul %153, %155, %cst_81 {dimension_numbers = #tpu.dot_dimension_numbers<[1], [0], [0], [1], [0, 0, 1, 1], [], []>} : vector<8x32xbf16>, vector<32x64xbf16>, vector<8x64xf32> -> vector<8x64xf32>
    %c0_82 = arith.constant 0 : index
    %c0_83 = arith.constant 0 : index
    %c0_84 = arith.constant 0 : index
    %157 = vector.load %arg10[%c0_82, %c0_83, %c0_84] : memref<1x1x64xf32, #tpu.memory_space<vmem>>, vector<1x1x64xf32>
    %158 = vector.shape_cast %157 : vector<1x1x64xf32> to vector<1x64xf32>
    %159 = vector.broadcast %158 : vector<1x64xf32> to vector<8x64xf32>
    %160 = arith.addf %156, %159 : vector<8x64xf32>
    %cst_85 = arith.constant 0.000000e+00 : f32
    %161 = vector.broadcast %cst_85 : f32 to vector<8x64xf32>
    %162 = arith.maximumf %160, %161 : vector<8x64xf32>
    %163 = arith.truncf %162 : vector<8x64xf32> to vector<8x64xbf16>
    %c0_86 = arith.constant 0 : index
    %c0_87 = arith.constant 0 : index
    %c0_88 = arith.constant 0 : index
    %164 = vector.load %arg11[%c0_86, %c0_87, %c0_88] : memref<1x64x32xbf16, #tpu.memory_space<vmem>>, vector<1x64x32xbf16>
    %165 = vector.shape_cast %164 : vector<1x64x32xbf16> to vector<64x32xbf16>
    %cst_89 = arith.constant dense<0.000000e+00> : vector<8x32xf32>
    %166 = tpu.matmul %163, %165, %cst_89 {dimension_numbers = #tpu.dot_dimension_numbers<[1], [0], [0], [1], [0, 0, 1, 1], [], []>} : vector<8x64xbf16>, vector<64x32xbf16>, vector<8x32xf32> -> vector<8x32xf32>
    %c0_90 = arith.constant 0 : index
    %c0_91 = arith.constant 0 : index
    %c0_92 = arith.constant 0 : index
    %167 = vector.load %arg12[%c0_90, %c0_91, %c0_92] : memref<1x1x32xf32, #tpu.memory_space<vmem>>, vector<1x1x32xf32>
    %168 = vector.shape_cast %167 : vector<1x1x32xf32> to vector<1x32xf32>
    %169 = vector.broadcast %168 : vector<1x32xf32> to vector<8x32xf32>
    %170 = arith.addf %166, %169 : vector<8x32xf32>
    %171 = arith.addf %170, %152 : vector<8x32xf32>
    %c0_93 = arith.constant 0 : index
    %c0_94 = arith.constant 0 : index
    %c0_95 = arith.constant 0 : index
    %172 = vector.load %arg13[%c0_93, %c0_94, %c0_95] : memref<1x8x32xf32, #tpu.memory_space<vmem>>, vector<1x8x32xf32>
    %173 = vector.shape_cast %172 : vector<1x8x32xf32> to vector<8x32xf32>
    %174 = vector.shape_cast %171 : vector<8x32xf32> to vector<1x8x32xf32>
    tpu.vector_store %arg13[%c0_93, %c0_94, %c0_95], %174 {strides = array<i32>} : memref<1x8x32xf32, #tpu.memory_space<vmem>>, vector<1x8x32xf32>,
    return
  }
  func.func @transform_0(%arg0: i32, %arg1: i32) -> (i32, i32, i32) {
    %c0_i32 = arith.constant 0 : i32
    %c0_i32_0 = arith.constant 0 : i32
    %c0_i32_1 = arith.constant 0 : i32
    return %arg0, %c0_i32, %c0_i32_0 : i32, i32, i32
  }
  func.func @transform_1(%arg0: i32, %arg1: i32) -> (i32, i32) {
    %c0_i32 = arith.constant 0 : i32
    %c0_i32_0 = arith.constant 0 : i32
    %c0_i32_1 = arith.constant 0 : i32
    return %c0_i32, %c0_i32_0 : i32, i32
  }
  func.func @transform_2(%arg0: i32, %arg1: i32) -> (i32, i32, i32) {
    %c0_i32 = arith.constant 0 : i32
    %c0_i32_0 = arith.constant 0 : i32
    %c0_i32_1 = arith.constant 0 : i32
    return %arg1, %c0_i32, %c0_i32_0 : i32, i32, i32
  }
  func.func @transform_3(%arg0: i32, %arg1: i32) -> (i32, i32, i32) {
    %c0_i32 = arith.constant 0 : i32
    %c0_i32_0 = arith.constant 0 : i32
    %c0_i32_1 = arith.constant 0 : i32
    return %arg1, %c0_i32, %c0_i32_0 : i32, i32, i32
  }
  func.func @transform_4(%arg0: i32, %arg1: i32) -> (i32, i32, i32) {
    %c0_i32 = arith.constant 0 : i32
    %c0_i32_0 = arith.constant 0 : i32
    %c0_i32_1 = arith.constant 0 : i32
    return %arg1, %c0_i32, %c0_i32_0 : i32, i32, i32
  }
  func.func @transform_5(%arg0: i32, %arg1: i32) -> (i32, i32, i32) {
    %c0_i32 = arith.constant 0 : i32
    %c0_i32_0 = arith.constant 0 : i32
    %c0_i32_1 = arith.constant 0 : i32
    return %arg1, %c0_i32, %c0_i32_0 : i32, i32, i32
  }
  func.func @transform_6(%arg0: i32, %arg1: i32) -> (i32, i32, i32) {
    %c0_i32 = arith.constant 0 : i32
    %c0_i32_0 = arith.constant 0 : i32
    %c0_i32_1 = arith.constant 0 : i32
    return %arg1, %c0_i32, %c0_i32_0 : i32, i32, i32
  }
  func.func @transform_7(%arg0: i32, %arg1: i32) -> (i32, i32, i32) {
    %c0_i32 = arith.constant 0 : i32
    %c0_i32_0 = arith.constant 0 : i32
    %c0_i32_1 = arith.constant 0 : i32
    return %arg1, %c0_i32, %c0_i32_0 : i32, i32, i32
  }
  func.func @transform_8(%arg0: i32, %arg1: i32) -> (i32, i32, i32) {
    %c0_i32 = arith.constant 0 : i32
    %c0_i32_0 = arith.constant 0 : i32
    %c0_i32_1 = arith.constant 0 : i32
    return %arg1, %c0_i32, %c0_i32_0 : i32, i32, i32
  }
  func.func @transform_9(%arg0: i32, %arg1: i32) -> (i32, i32, i32) {
    %c0_i32 = arith.constant 0 : i32
    %c0_i32_0 = arith.constant 0 : i32
    %c0_i32_1 = arith.constant 0 : i32
    return %arg1, %c0_i32, %c0_i32_0 : i32, i32, i32
  }
  func.func @transform_10(%arg0: i32, %arg1: i32) -> (i32, i32, i32) {
    %c0_i32 = arith.constant 0 : i32
    %c0_i32_0 = arith.constant 0 : i32
    %c0_i32_1 = arith.constant 0 : i32
    return %arg1, %c0_i32, %c0_i32_0 : i32, i32, i32
  }
  func.func @transform_11(%arg0: i32, %arg1: i32) -> (i32, i32, i32) {
    %c0_i32 = arith.constant 0 : i32
    %c0_i32_0 = arith.constant 0 : i32
    %c0_i32_1 = arith.constant 0 : i32
    return %arg0, %c0_i32, %c0_i32_0 : i32, i32, i32
  }
}

</mosaic_0001>

<bundles_post_ra>
// kernel: tpu_custom_call.1
= control target key start
LH: loop header
LB: loop body
LE: loop exit
PB: predicated region body
PF: predicated region fallthrough
CT: control target
= control target key end

     0   :  { %s2948_s0 = inlined_call_operand.hbm [shape: f32[2,8,32], index: 0, kind: input, shape index: {}]   ;;  %s2949_s1 = inlined_call_operand.hbm [shape: f32[8,8], index: 1, kind: input, shape index: {}]   ;;  %s2950_s2 = inlined_call_operand.hbm [shape: f32[2,4,32], index: 2, kind: input, shape index: {}]   ;;  %s2951_s3 = inlined_call_operand.vmem [shape: bf16[2,32,96], index: 3, kind: input, shape index: {}]   ;;  %s2952_s4 = inlined_call_operand.vmem [shape: f32[2,1,96], index: 4, kind: input, shape index: {}]   ;;  %s2953_s5 = inlined_call_operand.vmem [shape: bf16[2,32,32], index: 5, kind: input, shape index: {}]   ;;  %s2954_s6 = inlined_call_operand.hbm [shape: f32[2,1,32], index: 6, kind: input, shape index: {}]   ;;  %s2955_s7 = inlined_call_operand.vmem [shape: bf16[2,32,64], index: 7, kind: input, shape index: {}]   ;;  %s2956_s8 = inlined_call_operand.hbm [shape: f32[2,1,64], index: 8, kind: input, shape index: {}]   ;;  %s2957_s9 = inlined_call_operand.vmem [shape: bf16[2,64,32], index: 9, kind: input, shape index: {}]   ;;  %s2958_s10 = inlined_call_operand.vmem [shape: f32[2,1,32], index: 10, kind: input, shape index: {}]   ;;  %s2959_s11 = inlined_call_operand.hbm [shape: f32[2,8,32], index: 11, kind: output, shape index: {}]  }
   0x1   :  { %2980 = sst [smem:[#allocation29_spill]] %s2948_s0 }
   0x2   :  { %2981 = sst [smem:[#allocation30_spill]] %s2949_s1 }
   0x3   :  { %2982 = sst [smem:[#allocation31_spill]] %s2950_s2 }
   0x4   :  { %2983 = sst [smem:[#allocation32_spill]] %s2951_s3 }
   0x5   :  { %2984 = sst [smem:[#allocation33_spill]] %s2953_s5 }
   0x6   :  { %2985 = sst [smem:[#allocation34_spill]] %s2954_s6 }
   0x7   :  { %2986 = sst [smem:[#allocation35_spill]] %s2955_s7 }
   0x8   :  { %2987 = sst [smem:[#allocation36_spill]] %s2956_s8 }
   0x9   :  { %2988 = sst [smem:[#allocation37_spill]] %s2957_s9 }
   0xa   :  { %2989 = sst [smem:[#allocation38_spill]] %s2958_s10 }
   0xb   :  { %2990 = sst [smem:[#allocation39_spill]] %s2959_s11 }
   0xc   :  { %16 = vsyncpa [#allocation5], 0 }
   0xd   :  { %18 = vsyncpa [#allocation5 + $0x1], 0 }
   0xe   :  { %19 = vsyncpa [#allocation8], 0 }
   0xf   :  { %20 = vsyncpa [#allocation6], 0 }
  0x10   :  { %22 = vsyncpa [#allocation6 + $0x1], 0  ;;  %s2394_s17 = smov 0   ;;  %s2396_s18 = smov 0  }
  0x11   :  { %s2398_s19 = smov 0   ;;  %s2400_s20 = smov 0  }
  0x12   :  { %s2402_s21 = smov 0   ;;  %s2404_s22 = smov 0  }
  0x13   :  { %s2406_s23 = smov 0   ;;  %s2408_s24 = smov 0  }
  0x14   :  { %s2410_s25 = smov 0   ;;  %s2412_s26 = smov 0  }
  0x15   :  { %s2414_s27 = smov 0  }
  0x16 LB: > { %2991 = sst [smem:[#allocation17_spill]] %s2274_s18  ;;  %p2961_p0 = scmp.ne.s32.totalorder %s2290_s22, %s2286_s21  ;;  %s2310_s27 = sphi %s2414_s27, %s28_s27   ;;  %s2306_s26 = sphi %s2412_s26, %s3051_s26   ;;  %s2302_s25 = sphi %s2410_s25, %s3050_s25   ;;  %s2298_s24 = sphi %s2408_s24, %s3049_s24   ;;  %s2294_s23 = sphi %s2406_s23, %s3048_s23   ;;  %s2290_s22 = sphi %s2404_s22, %s3047_s22   ;;  %s2286_s21 = sphi %s2402_s21, %s3053_s21   ;;  %s2282_s20 = sphi %s2400_s20, %s3052_s20   ;;  %s2278_s19 = sphi %s2398_s19, %s3045_s19   ;;  %s2274_s18 = sphi %s2396_s18, %s3044_s18   ;;  %s2270_s17 = sphi %s2394_s17, %s3043_s17  }
  0x17   : > { %2992 = sst [smem:[#allocation18_spill]] %s2278_s19  ;;  %p55_p1 = scmp.eq.s32.totalorder %s2310_s27, 0 }
  0x18   : > { %2993 = sst [smem:[#allocation19_spill]] %s2282_s20  ;;  %p101_p2 = scmp.ne.s32.totalorder %s2278_s19, %s2274_s18 }
  0x19   : > { %2994 = sst [smem:[#allocation20_spill]] %s2290_s22  ;;  %p56_p3 = por %p55_p1, %p2961_p0 }
  0x1a   : > { %2995 = sst [smem:[#allocation21_spill]] %s2298_s24  ;;  %p1894_p4 = scmp.lt.s32.totalorder %s2310_s27, 4 }
  0x1b   : > { %2996 = sst [smem:[#allocation22_spill]] %s2302_s25  ;;  %p103_p5 = por %p101_p2, %p55_p1 }
  0x1c   : > { %2997 = sst [smem:[#allocation23_spill]] %s2306_s26  ;;  %s376_s30 = sand.u32 1, %s2310_s27  }
  0x1d   : > { %s378_s12 = sand.u32 1, %s2290_s22   ;;  %s1687_s14 = sshll.u32 %s2306_s26, 7 }
  0x1e   : > { %s1686_s13 = sshll.u32 %s378_s12, 3  ;;  %s2998_s0 = sld [smem:[#allocation29_spill]] }
  0x1f   : > { %s380_s29 = scalar_lea.vmem [#allocation4], %s1686_s13  ;;  %p2468_p6 = pnand %p1894_p4, %p56_p3 }
  0x20   : > { %s387_s28 = sshll.u32 %s380_s29, 4  ;;  %p2474_p7 = pnand %p1894_p4, %p103_p5  ;;  %s2472_s28 = int_to_ptr.vmem [resolvable:$true] %s387_s28 }
  0x21   : > { %p2034_p9 = pneg %p2468_p6 }
  0x22   : > { %s3000_s12 = scalar_select %p2474_p7, 1, 0 }
  0x24   : > { %s2466_s11 = scalar_lea.hbm %s2998_s0, %s1687_s14  ;;  %s2478_s14 = scalar_lea.sflag [#allocation5], %s376_s30 }
  0x25   : > { %s2032_s15 = scalar_lea.hbm %s2466_s11, 128  ;;  %s2037_s16 = scalar_lea.hbm %s2998_s0, 256 }
  0x26   : > { %p2033_p8 = scmp.ne.s32.totalorder %s2466_s11, %s2032_s15  ;;  %p2038_p12 = scmp.lt.u32.totalorder %s2466_s11, %s2998_s0 }
  0x27   : > { %p2039_p13 = scmp.lt.u32.totalorder %s2037_s16, %s2032_s15  ;;  %p2041_p2 = scmp.lt.u32.totalorder %s2032_s15, %s2466_s11 }
  0x28   : > { %p2035_p10 = pnand %p2034_p9, %p2033_p8 }
  0x29   : > { %p2040_p1 = por %p2039_p13, %p2038_p12 }
  0x2a   : > { %p2036_p11 = pneg %p2035_p10 }
  0x2b   : > { %p2042_p3 = por %p2041_p2, %p2040_p1 }
  0x2d   : > { %p2043_p4 = pnand %p2042_p3, %p2036_p11 }
  0x2f   : > { %2046 = shalt.err (!%p2043_p4)
}
  0x30   : > { %s2047_s30 = scalar_lea.vmem %s2472_s28, 128  ;;  %s2312_s29 = smov [#allocation4]  }
  0x31   : > { %p2048_p5 = scmp.ne.s32.totalorder %s2472_s28, %s2047_s30  ;;  %s2052_s13 = sshll.u32 %s2312_s29, 4  ;;  %s2053_s13 = int_to_ptr.vmem [resolvable:$false] %s2052_s13 }
  0x32   : > { %s2054_s9 = scalar_lea.vmem %s2053_s13, 256  ;;  %p2055_p0 = scmp.lt.s32.totalorder %s2472_s28, %s2053_s13 }
  0x33   : > { %p2050_p8 = pnand %p2048_p5, %p2034_p9  ;;  %p2056_p12 = scmp.lt.s32.totalorder %s2054_s9, %s2047_s30 }
  0x35   : > { %p2051_p10 = pneg %p2050_p8  ;;  %p2057_p13 = por %p2056_p12, %p2055_p0 }
  0x37   : > { %p2058_p1 = pnand %p2057_p13, %p2051_p10 }
  0x39   : > { %2061 = shalt.err (!%p2058_p1)
}
  0x3a   : > { %1879 = dma.hbm_to_vmem [thread:$0]  (!%p2468_p6), %s2466_s11, 128, %s2472_s28, %s2478_s14  }
  0x3b   : > { %s37_s10 = sadd.s32 1, %s2302_s25  ;;  %s94_s15 = sadd.s32 1, %s2278_s19 }
  0x3c   : > { %p38_p0 = scmp.ge.s32.totalorder %s37_s10, 2  ;;  %s2509_s16 = sand.u32 1, %s2278_s19  }
  0x3d   : > { %s1688_s24 = sshll.u32 %s2509_s16, 2  ;;  %s1689_s30 = sshll.u32 %s2302_s25, 6 }
  0x3e   : > { %s3055_s10 = smov (%p38_p0, %s37_s10), 0  ;;  %s3002_s29 = sadd.s32 1, %s2306_s26 }
  0x3f   : > { %3001 = sst [smem:[#allocation24_spill]] %s3055_s10  ;;  %s3057_s29 = smov (!%p38_p0, %s3002_s29), %s2306_s26 }
  0x40   : > { %s91_s13 = ssub.s32 %s2302_s25, %s3055_s10  ;;  %p42_p9 = scmp.ge.s32.totalorder %s3057_s29, 2 }
  0x41   : > { %p92_p11 = scmp.eq.s32.totalorder %s91_s13, 0  ;;  %s3003_s2 = sld [smem:[#allocation31_spill]] }
  0x42   : > { %s398_s0 = scalar_lea.vmem [#allocation9], %s1688_s24  ;;  %s3059_s29 = smov (%p42_p9, %s3057_s29), 0 }
  0x43   : > { %s405_s7 = sshll.u32 %s398_s0, 4  ;;  %3004 = sst [smem:[#allocation25_spill]] %s3059_s29  ;;  %s2532_s7 = int_to_ptr.vmem [resolvable:$true] %s405_s7 }
  0x44   : > { %s2528_s5 = scalar_select %p92_p11, %s2278_s19, %s94_s15  }
  0x45   : > { %s44_s3 = ssub.s32 %s2306_s26, %s3059_s29  ;;  %p2542_p3 = pneg %p2474_p7 }
  0x46   : > { %3005 = sst [smem:[#allocation26_spill]] %s2528_s5  ;;  %p2534_p6 = scmp.eq.s32.totalorder %s44_s3, 0 }
  0x47   : > { %s2523_s9 = scalar_lea.hbm %s3003_s2, %s1689_s30  ;;  %s2067_s24 = scalar_lea.hbm %s3003_s2, 128 }
  0x48   : > { %s3006_s13 = scalar_select %p2534_p6, 1, 0 }
  0x49   : > { %s2062_s30 = scalar_lea.hbm %s2523_s9, 64  ;;  %p2068_p8 = scmp.lt.u32.totalorder %s2523_s9, %s3003_s2 }
  0x4a   : > { %p2063_p2 = scmp.ne.s32.totalorder %s2523_s9, %s2062_s30  ;;  %p2069_p10 = scmp.lt.u32.totalorder %s2067_s24, %s2062_s30 }
  0x4b   : > { %p2071_p13 = scmp.lt.u32.totalorder %s2062_s30, %s2523_s9 }
  0x4c   : > { %p2065_p4 = pnand %p2542_p3, %p2063_p2  ;;  %p2070_p12 = por %p2069_p10, %p2068_p8 }
  0x4e   : > { %p2066_p5 = pneg %p2065_p4  ;;  %p2072_p1 = por %p2071_p13, %p2070_p12 }
  0x50   : > { %p2073_p0 = pnand %p2072_p1, %p2066_p5 }
  0x52   : > { %2076 = shalt.err (!%p2073_p0)
}
  0x53   : > { %s2077_s29 = scalar_lea.vmem %s2532_s7, 64  ;;  %s2313_s0 = smov [#allocation9]  }
  0x54   : > { %p2078_p9 = scmp.ne.s32.totalorder %s2532_s7, %s2077_s29  ;;  %s2082_s15 = sshll.u32 %s2313_s0, 4  ;;  %s2083_s15 = int_to_ptr.vmem [resolvable:$false] %s2082_s15 }
  0x55   : > { %s2084_s28 = scalar_lea.vmem %s2083_s15, 128  ;;  %p2085_p4 = scmp.lt.s32.totalorder %s2532_s7, %s2083_s15 }
  0x56   : > { %p2080_p11 = pnand %p2078_p9, %p2542_p3  ;;  %p2086_p6 = scmp.lt.s32.totalorder %s2084_s28, %s2077_s29 }
  0x58   : > { %p2081_p2 = pneg %p2080_p11  ;;  %p2087_p8 = por %p2086_p6, %p2085_p4 }
  0x5a   : > { %p2088_p10 = pnand %p2087_p8, %p2081_p2 }
  0x5c   : > { %2091 = shalt.err (!%p2088_p10)
}
  0x5d   : > { %1882 = dma.hbm_to_vmem [thread:$0]  (!%p2474_p7), %s2523_s9, 64, %s2532_s7, %s2478_s14  }
  0x5e   : > { %s3008_s30 = sadd.s32 1, %s2290_s22  ;;  %p3009_p5 = scmp.ne.s32.totalorder %s3006_s13, 0 }
  0x5f   : > { %s1690_s29 = sshll.u32 %s2302_s25, 4  ;;  %s437_s3 = scalar_lea.vmem [#allocation10], %s2509_s16 }
  0x60   : > { %s2571_s24 = scalar_select %p3009_p5, %s2290_s22, %s3008_s30  }
  0x61   : > { %s444_s0 = sshll.u32 %s437_s3, 4  ;;  %s3011_s6 = sld [smem:[#allocation34_spill]]  ;;  %s445_s0 = int_to_ptr.vmem [resolvable:$true] %s444_s0 }
  0x62   : > { %3010 = sst [smem:[#allocation27_spill]] %s2571_s24 }
  0x67   : > { %s442_s2 = scalar_lea.hbm %s3011_s6, %s1690_s29  ;;  %s2097_s9 = scalar_lea.hbm %s3011_s6, 32 }
  0x68   : > { %s2092_s10 = scalar_lea.hbm %s442_s2, 16  ;;  %p2098_p1 = scmp.lt.u32.totalorder %s442_s2, %s3011_s6 }
  0x69   : > { %p2093_p6 = scmp.ne.s32.totalorder %s442_s2, %s2092_s10  ;;  %p2099_p0 = scmp.lt.u32.totalorder %s2097_s9, %s2092_s10 }
  0x6a   : > { %p2101_p11 = scmp.lt.u32.totalorder %s2092_s10, %s442_s2 }
  0x6b   : > { %p2095_p12 = pnand %p2093_p6, %p2542_p3  ;;  %p2100_p9 = por %p2099_p0, %p2098_p1 }
  0x6d   : > { %p2096_p13 = pneg %p2095_p12  ;;  %p2102_p2 = por %p2101_p11, %p2100_p9 }
  0x6f   : > { %p2103_p4 = pnand %p2102_p2, %p2096_p13 }
  0x71   : > { %2106 = shalt.err (!%p2103_p4)
}
  0x72   : > { %s2107_s3 = scalar_lea.vmem %s445_s0, 16  ;;  %s2314_s15 = smov [#allocation10]  }
  0x73   : > { %p2108_p8 = scmp.ne.s32.totalorder %s445_s0, %s2107_s3  ;;  %s2112_s28 = sshll.u32 %s2314_s15, 4  ;;  %s2113_s28 = int_to_ptr.vmem [resolvable:$false] %s2112_s28 }
  0x74   : > { %s2114_s26 = scalar_lea.vmem %s2113_s28, 32  ;;  %p2115_p6 = scmp.lt.s32.totalorder %s445_s0, %s2113_s28 }
  0x75   : > { %p2110_p10 = pnand %p2108_p8, %p2542_p3  ;;  %p2116_p12 = scmp.lt.s32.totalorder %s2114_s26, %s2107_s3 }
  0x77   : > { %p2111_p5 = pneg %p2110_p10  ;;  %p2117_p7 = por %p2116_p12, %p2115_p6 }
  0x79   : > { %p2118_p0 = pnand %p2117_p7, %p2111_p5 }
  0x7b   : > { %2121 = shalt.err (!%p2118_p0)
}
  0x7c   : > { %p3012_p1 = scmp.ne.s32.totalorder %s3000_s12, 0  ;;  %s2594_s10 = sadd.s32 4294967295, %s2310_s27  }
  0x7d   : > { %s1682_s7 = sadd.s32 4294967294, %s2310_s27   ;;  %p60_p7 = scmp.ne.s32.totalorder %s2286_s21, %s2282_s20 }
  0x7e   : > { %1885 = dma.hbm_to_vmem [thread:$0]  (!%p3012_p1), %s442_s2, 16, %s445_s0, %s2478_s14  }
  0x7f   : > { %p2970_p13 = scmp.eq.s32.totalorder %s2594_s10, 0  ;;  %p107_p9 = scmp.ne.s32.totalorder %s2274_s18, %s2270_s17 }
  0x80   : > { %p339_p11 = scmp.eq.s32.totalorder %s2594_s10, 3  ;;  %p345_p4 = scmp.eq.s32.totalorder %s1682_s7, 3 }
  0x81   : > { %p2605_p2 = por %p2970_p13, %p60_p7  ;;  %p2611_p8 = por %p107_p9, %p2970_p13 }
  0x82   : > { %p3015_p10 = scmp.ne.s32.totalorder %s2290_s22, %s2286_s21  ;;  %p2622_p6 = por %p345_p4, %p60_p7 }
  0x83   : > { %s3013_s9 = scalar_select %p2605_p2, 1, 0 }
  0x84   : > { %s3014_s2 = scalar_select %p2611_p8, 1, 0 }
  0x85   : > { %p2618_p5 = por %p339_p11, %p3015_p10  ;;  %p1683_p12 = scmp.ge.s32.totalorder %s2310_s27, 1 }
  0x86   : > { %s3017_s17 = scalar_select %p2622_p6, 1, 0 }
  0x87   : > { %s3016_s0 = scalar_select %p2618_p5, 1, 0 }
  0x88   : > { %3018 = sst [smem:[#allocation28_spill]] %s3017_s17  ;;  %p352_p0 = scmp.lt.s32.totalorder %s2310_s27, 5 }
  0x89   : > { %s2315_s30 = smov [#allocation7]   ;;  %s3020_s8 = sld [smem:[#allocation36_spill]] }
  0x8a   : > { %p2628_p2 = pnand %p1683_p12, %p352_p0  ;;  %s365_s3 = sshll.u32 %s2315_s30, 4  ;;  %s2644_s3 = int_to_ptr.vmem [resolvable:$true] %s365_s3 }
  0x8b   : > { %s462_s7 = scalar_lea.vmem [#allocation11], %s2509_s16 }
  0x8c   : > { %s3019_s13 = scalar_select %p2628_p2, 1, 0 }
  0x8d   : > { %p1872_p7 = pneg %p2628_p2  ;;  %s469_s6 = sshll.u32 %s462_s7, 4  ;;  %s2642_s6 = int_to_ptr.vmem [resolvable:$true] %s469_s6 }
  0x8f   : > { %s2637_s26 = scalar_lea.hbm %s3020_s8, %s1690_s29  ;;  %p2648_p9 = pnand %p1872_p7, %p2970_p13 }
  0x90   : > { %s2122_s15 = scalar_lea.hbm %s2637_s26, 16  ;;  %s2127_s25 = scalar_lea.hbm %s3020_s8, 32 }
  0x91   : > { %s3021_s30 = scalar_select %p2648_p9, 1, 0 }
  0x92   : > { %p2123_p11 = scmp.ne.s32.totalorder %s2637_s26, %s2122_s15  ;;  %p2128_p12 = scmp.lt.u32.totalorder %s2637_s26, %s3020_s8 }
  0x93   : > { %p2129_p0 = scmp.lt.u32.totalorder %s2127_s25, %s2122_s15  ;;  %p2131_p5 = scmp.lt.u32.totalorder %s2122_s15, %s2637_s26 }
  0x94   : > { %p2125_p4 = pnand %p2123_p11, %p2542_p3 }
  0x95   : > { %p2130_p6 = por %p2129_p0, %p2128_p12 }
  0x96   : > { %p2126_p10 = pneg %p2125_p4 }
  0x97   : > { %p2132_p7 = por %p2131_p5, %p2130_p6 }
  0x99   : > { %p2133_p13 = pnand %p2132_p7, %p2126_p10 }
  0x9b   : > { %2136 = shalt.err (!%p2133_p13)
}
  0x9c   : > { %s2137_s24 = scalar_lea.vmem %s2642_s6, 16  ;;  %s2316_s29 = smov [#allocation11]  }
  0x9d   : > { %p2138_p11 = scmp.ne.s32.totalorder %s2642_s6, %s2137_s24  ;;  %s2142_s28 = sshll.u32 %s2316_s29, 4  ;;  %s2143_s28 = int_to_ptr.vmem [resolvable:$false] %s2142_s28 }
  0x9e   : > { %s2144_s16 = scalar_lea.vmem %s2143_s28, 32  ;;  %p2145_p2 = scmp.lt.s32.totalorder %s2642_s6, %s2143_s28 }
  0x9f   : > { %p2140_p4 = pnand %p2138_p11, %p2542_p3  ;;  %p2146_p9 = scmp.lt.s32.totalorder %s2144_s16, %s2137_s24 }
  0xa1   : > { %p2141_p8 = pneg %p2140_p4  ;;  %p2147_p12 = por %p2146_p9, %p2145_p2 }
  0xa3   : > { %p2148_p0 = pnand %p2147_p12, %p2141_p8 }
  0xa5   : > { %2151 = shalt.err (!%p2148_p0)
}
  0xa6   : > { %1888 = dma.hbm_to_vmem [thread:$0]  (!%p3012_p1), %s2637_s26, 16, %s2642_s6, %s2478_s14  }
  0xa7   : > { %s3022_s1 = sld [smem:[#allocation30_spill]]  ;;  %p3023_p13 = scmp.ne.s32.totalorder %s3021_s30, 0 }
  0xa9   : > { %p2154_p5 = pneg %p3023_p13 }
  0xad   : > { %s2152_s15 = scalar_lea.hbm %s3022_s1, 128 }
  0xae   : > { %p2153_p3 = scmp.ne.s32.totalorder %s3022_s1, %s2152_s15  ;;  %p2159_p6 = scmp.lt.u32.totalorder %s2152_s15, %s3022_s1 }
  0xb0   : > { %p2155_p2 = pnand %p2154_p5, %p2153_p3 }
  0xb2   : > { %p2156_p8 = pneg %p2155_p2 }
  0xb4   : > { %p2161_p9 = pnand %p2159_p6, %p2156_p8 }
  0xb6   : > { %2164 = shalt.err (!%p2161_p9)
}
  0xb7   : > { %s2165_s6 = scalar_lea.vmem %s2644_s3, 128  ;;  %p2173_p11 = scmp.lt.s32.totalorder %s2644_s3, %s2644_s3 }
  0xb8   : > { %p2166_p1 = scmp.ne.s32.totalorder %s2644_s3, %s2165_s6  ;;  %p2174_p4 = scmp.lt.s32.totalorder %s2165_s6, %s2165_s6 }
  0xba   : > { %p2168_p10 = pnand %p2166_p1, %p2154_p5  ;;  %p2175_p12 = por %p2174_p4, %p2173_p11 }
  0xbc   : > { %p2169_p7 = pneg %p2168_p10 }
  0xbe   : > { %p2176_p0 = pnand %p2175_p12, %p2169_p7 }
  0xc0   : > { %2179 = shalt.err (!%p2176_p0)
}
  0xc1   : > { %1875 = dma.hbm_to_vmem [thread:$0]  (!%p3023_p13), %s3022_s1, 128, %s2644_s3, [#allocation8]  }
  0xc2   : > { %p3024_p3 = scmp.ne.s32.totalorder %s3019_s13, 0 }
  0xc3   : > { %s494_s26 = sand.u32 (!%p3024_p3), 1, %s2594_s10   ;;  %s2974_s16 = sand.u32 (!%p3024_p3), 1, %s2286_s21  }
  0xc4   : > { %492 = sbr.rel (%p3024_p3) target bundleno = 2798 (0xaee), region = 64  ;;  %s1693_s25 = sshll.u32 (!%p3024_p3), %s2974_s16, 3 }
  0xc5   : > { %s495_s11 = scalar_lea.sflag (!%p3024_p3), [#allocation5], %s494_s26  ;;  %s498_s15 = scalar_lea.vmem (!%p3024_p3), [#allocation4], %s1693_s25 }
  0xc6   : > { %p3025_p5 = scmp.ne.s32.totalorder (!%p3024_p3), %s3013_s9, 0 }
  0xcb   : > { %2253 = dma.done.wait (%p3025_p5), %s495_s11, 128  }
  0xcc   : > { %2255 = vsyncadd (%p3025_p5), %s495_s11, 4294967168  ;;  %p3026_p13 = scmp.eq.s32.totalorder %s2594_s10, 0 }
  0xce   : > { %2257 = dma.done.wait (%p3026_p13), [#allocation8], 128   ;;  %p3027_p2 = pmov %p3026_p13 }
  0xcf   : > { %s2710_s13 = sand.u32 1, %s2274_s18   ;;  %p3028_p8 = scmp.ne.s32.totalorder %s3014_s2, 0 }
  0xd0   : > { %2259 = vsyncadd (%p3027_p2), [#allocation8], 4294967168  ;;  %s1695_s3 = sshll.u32 %s2710_s13, 2 }
  0xd1   : > { %s2713_s30 = scalar_lea.vmem [#allocation9], %s1695_s3 }
  0xd2   : > { %2261 = dma.done.wait (%p3028_p8), %s495_s11, 96  }
  0xd3   : > { %2263 = vsyncadd (%p3028_p8), %s495_s11, 4294967200  ;;  %p605_p6 = scmp.lt.s32.totalorder %s2294_s23, 1  ;;  %s3029_s2 = sld [smem:[#allocation32_spill]] }
  0xd4   : > { %s3030_s11 = sld [smem:[#allocation33_spill]]  ;;  %s3031_s8 = sld [smem:[#allocation35_spill]] }
  0xd5   : > { %s2721_s10 = scalar_select %p605_p6, %s2294_s23, 1 }
  0xd6   : > { %s3032_s17 = sld [smem:[#allocation37_spill]]  ;;  %s3033_s28 = sld [smem:[#allocation38_spill]] }
  0xd7   : > { %s1740_s9 = sshll.u32 %s2721_s10, 4  ;;  %s1743_s5 = sshll.u32 %s2721_s10, 5 }
  0xd8   : > { %s527_s20 = scalar_lea.vmem [#allocation11], %s2710_s13  ;;  %s2753_s14 = scalar_lea.vmem [#allocation12], %s1693_s25 }
  0xd9   : > { %s609_s12 = scalar_lea.vmem %s3029_s2, %s1740_s9  ;;  %s519_s2 = scalar_lea.vmem [#allocation10], %s2710_s13 }
  0xda   : > { %s2734_s3 = scalar_lea.vmem %s3030_s11, %s1740_s9  ;;  %s2739_s22 = scalar_lea.vmem %s3031_s8, %s1740_s9 }
  0xdb   : > { %p1705_p9 = scmp.ne.s32.totalorder %s2294_s23, 0 }
  0xdc   : > { %s2745_s7 = scalar_lea.vmem %s3032_s17, %s1743_s5  ;;  %s630_s6 = scalar_lea.vmem %s3033_s28, %s2721_s10  ;;  %v636_v0 = vld [vmem:[%s498_s15] sm:$0xff] (!%p1705_p9)  ;;  %vm637_vm0 = vcmask (!%p1705_p9), 261120  }
  0xdd   : > { %635 = sbr.rel (%p1705_p9) target bundleno = 228 (0xe4), region = 88  ;;  %638 = vst.msk [vmem:[%s2753_s14] sm:$0xff] (!%p1705_p9), %vm637_vm0, %v636_v0 }
  0xe4 PF: > { %v639_v1 = vld [vmem:[%s2753_s14] sm:$0xff]  ;;  %vm644_vm1 = vcmask 261120   ;;  %v2317_v9 = vmov 0.0   ;;  %v2003_v10 = vld [vmem:[%s609_s12 + $0x8] sm:$0xff]   ;;  %vm2318_vm2 = vmmov 0   ;;  %s3034_s8 = scalar_lea.vmem %s2952_s4, %s2721_s10  ;;  %vm736_vm3 = vcmask 785408  }
  0xe5   : > { %v645_v2 = vsel %vm644_vm1, %v639_v1, 0.0  ;;  %v2002_v8 = vld [vmem:[%s609_s12] sm:$0xff]   ;;  %1774 = vmatprep.subr.bf16.mxu0 %v2317_v9  ;;  %1782 = vmatprep.subr.bf16.mxu1 %v2317_v9  ;;  %v1706_v15 = vld [vmem:[%s2713_s30] ss:$0 sm:$0xff]  ;;  %v1707_v17 = vld [vmem:[%s2713_s30 + $0x1] ss:$0 sm:$0xff] }
  0xe6   : > { %646 = vadd.xlane.f32.xlu0 %v645_v2  ;;  %1775 = vmatpush3.bf16.msra.mxu0 %v2002_v8  ;;  %v1708_v21 = vld [vmem:[%s3034_s8] ss:$0 sm:$0xff]  ;;  %s2319_s18 = smov 120   ;;  %s2320_s19 = smov 96   ;;  %vm744_vm4 = vcmask 64512   ;;  %vm808_vm5 = vcmask 1043456  }
  0xe7   : > { %1778 = vmatprep.mubr.msk.bf16.mxu0 %vm2318_vm2, %v2317_v9  ;;  %1776 = vmatprep.subr.bf16.mxu0 %v2317_v9  ;;  %s2321_s23 = smov 88   ;;  %s2322_s17 = smov 80   ;;  %v738_v40 = vld [vmem:[#allocation7] sm:$0xff]  ;;  %vm970_vm6 = vcmask 130112   ;;  %vm1089_vm7 = vcmask 195712   ;;  %vm1208_vm8 = vcmask 261312  }
  0xe8   : > { %1784 = vmatprep.mubr.msk.bf16.mxu1 %vm2318_vm2, %v2317_v9  ;;  %s2323_s16 = smov 112   ;;  %s2324_s25 = smov 72   ;;  %vm1410_vm9 = vcmask 523264  }
  0xe9   : > { %s2325_s15 = smov 104   ;;  %s2326_s9 = smov 64  }
  0xea   : > { %1777 = vmatpush3.bf16.msra.mxu0 %v2003_v10  ;;  %s2327_s24 = smov 56   ;;  %s2328_s12 = smov 48  }
  0xeb   : > { %1788 = vmatprep.subr.bf16.mxu0 %v2317_v9  ;;  %s2329_s26 = smov 40   ;;  %s2330_s11 = smov 8  }
  0xec   : > { %s2331_s29 = smov 16   ;;  %s2332_s28 = smov 24  }
  0xed   : > { %s3037_s5 = sld [smem:[#allocation39_spill]]  ;;  %s3038_s10 = sand.u32 1, %s2286_s21  }
  0xee   : > { %p3039_p10 = scmp.ne.s32.totalorder %s3016_s0, 0 }
 0x173   : > { %v647_v3 = vpop.xlane.xlu0 %646 }
 0x174   : > { %v649_v4 = vmul.f32 0.03125, %v647_v3 }
 0x176   : > { %v650_v5 = vsub.f32 %v639_v1, %v649_v4 }
 0x178   : > { %v651_v6 = vmul.f32 %v650_v5, %v650_v5 }
 0x17a   : > { %v652_v7 = vsel %vm644_vm1, %v651_v6, 0.0 }
 0x17b   : > { %653 = vadd.xlane.f32.xlu0 %v652_v7 }
 0x208   : > { %v654_v11 = vpop.xlane.xlu0 %653 }
 0x209   : > { %v655_v12 = vmul.f32 0.03125, %v654_v11 }
 0x20b   : > { %v656_v13 = vadd.f32 1e-12, %v655_v12 }
 0x20d   : > { %2012 = vrsqrt.f32 %v656_v13 }
 0x217   : > { %v2013_v14 = vpop.eup %2012 }
 0x218   : > { %v658_v16 = vmul.f32 %v2013_v14, %v650_v5 }
 0x21a   : > { %v663_v18 = vmul.f32 %v1706_v15, %v658_v16 }
 0x21c   : > { %v2770_v19 = vadd.f32 %v1707_v17, %v663_v18 }
 0x21e   : > { %v669_v20 = vpack.c.bf16 %v2770_v19, %v2770_v19 }
 0x220   : > { %1779 = vmatmul.mubr.msk.bf16.vlgmr.msra.gmra.mrb[0].mxu0 %vm644_vm1, %v669_v20 }
 0x221   : > { %1790 = vmatprep.mubr.msk.bf16.mxu0 %vm2318_vm2, %v2317_v9 }
 0x2f3   : > { %v730_v22 = vpop.f32.mrb[0].mxu0 }
 0x2f4   : > { %v731_v23 = vadd.f32 %v1708_v21, %v730_v22  ;;  %v1780_v24 = vpop.f32.mrb[1].mxu0 }
 0x2f5   : > { %v733_v25 = vpop.f32.mrb[2].mxu0 }
 0x2f6   : > { %737 = vst.msk [vmem:[#allocation2] sm:$0xff] %vm736_vm3, %v731_v23  ;;  %v1781_v26 = vpop.f32.mrb[3].mxu0 }
 0x2fd   : > { %v853_v27 = vld [vmem:[#allocation2] sm:$0xff] }
 0x2fe   : > { %v2782_v28 = vpack.c.bf16 %v853_v27, %v853_v27 }
 0x300   : > { %856 = vrot.lane.b32.xlu0 %v2782_v28, %s2319_s18  ;;  %742 = vrot.lane.b32.xlu1 %v2782_v28, %s2320_s19  ;;  %s2333_s19 = smov [#allocation12]  }
 0x304   : > { %858 = vrot.lane.b32.xlu1 %v2782_v28, %s2321_s23  ;;  %s2184_s23 = sshll.u32 %s2333_s19, 4  ;;  %s2185_s23 = int_to_ptr.vmem [resolvable:$false] %s2184_s23 }
 0x308   : > { %977 = vrot.lane.b32.xlu1 %v2782_v28, %s2322_s17  ;;  %s2186_s17 = scalar_lea.vmem %s2185_s23, 256 }
 0x30c   : > { %975 = vrot.lane.b32.xlu1 %v2782_v28, %s2323_s16 }
 0x310   : > { %1096 = vrot.lane.b32.xlu1 %v2782_v28, %s2324_s25 }
 0x314   : > { %1094 = vrot.lane.b32.xlu1 %v2782_v28, %s2325_s15 }
 0x372   : > { %v743_v29 = vpop.permute.xlu1 %742  ;;  %v857_v34 = vpop.permute.xlu0 %856 }
 0x373   : > { %v749_v30 = vsel %vm744_vm4, %v743_v29, 0 }
 0x374   : > { %1783 = vmatpush3.bf16.xpose.msra.mxu1 %v749_v30 }
 0x375   : > { %1794 = vmatprep.subr.bf16.mxu1 %v2317_v9 }
 0x376   : > { %v859_v31 = vpop.permute.xlu1 %858 }
 0x377   : > { %v864_v32 = vsel %vm744_vm4, %v859_v31, 0 }
 0x37a   : > { %v978_v33 = vpop.permute.xlu1 %977 }
 0x37b   : > { %1785 = vmatmul.mubr.msk.bf16.vlgmr.msra.gmra.mrb[0].mxu1 %vm744_vm4, %v2782_v28  ;;  %v983_v36 = vsel %vm744_vm4, %v978_v33, 0 }
 0x37c   : > { %1795 = vmatpush3.bf16.xpose.msra.mxu1 %v864_v32  ;;  %1796 = vmatprep.mubr.msk.bf16.mxu1 %vm2318_vm2, %v2317_v9 }
 0x37d   : > { %1806 = vmatprep.subr.bf16.mxu1 %v2317_v9 }
 0x37e   : > { %v976_v35 = vpop.permute.xlu1 %975 }
 0x382   : > { %v1097_v37 = vpop.permute.xlu1 %1096 }
 0x383   : > { %1797 = vmatmul.mubr.msk.bf16.vlgmr.msra.gmra.mrb[4].mxu1 %vm744_vm4, %v857_v34  ;;  %v1102_v38 = vsel %vm744_vm4, %v1097_v37, 0 }
 0x384   : > { %1807 = vmatpush3.bf16.xpose.msra.mxu1 %v983_v36  ;;  %1808 = vmatprep.mubr.msk.bf16.mxu1 %vm2318_vm2, %v2317_v9 }
 0x385   : > { %1818 = vmatprep.subr.bf16.mxu1 %v2317_v9 }
 0x386   : > { %v1095_v39 = vpop.permute.xlu1 %1094 }
 0x38b   : > { %1809 = vmatmul.mubr.msk.bf16.vlgmr.msra.gmra.mrb[8].mxu1 %vm744_vm4, %v976_v35 }
 0x38c   : > { %1819 = vmatpush3.bf16.xpose.msra.mxu1 %v1102_v38  ;;  %1820 = vmatprep.mubr.msk.bf16.mxu1 %vm2318_vm2, %v2317_v9 }
 0x38d   : > { %1830 = vmatprep.subr.bf16.mxu1 %v2317_v9 }
 0x393   : > { %1821 = vmatmul.mubr.msk.bf16.vlgmr.msra.gmra.mrb[12].mxu1 %vm744_vm4, %v1095_v39 }
 0x394   : > { %1834 = vmatprep.mubr.msk.bf16.mxu1 %vm2318_vm2, %v2317_v9 }
 0x44e   : > { %v785_v41 = vpop.f32.mrb[0].mxu1 }
 0x44f   : > { %v786_v42 = vadd.f32 %v785_v41, %v738_v40  ;;  %v1786_v43 = vpop.f32.mrb[1].mxu1 }
 0x450   : > { %v788_v44 = vpop.f32.mrb[2].mxu1 }
 0x451   : > { %v1787_v45 = vpop.f32.mrb[3].mxu1  ;;  %v791_v46 = vsel %vm744_vm4, %v786_v42, -inf }
 0x452   : > { %792 = vmax.xlane.f32.xlu1 %v791_v46 }
 0x456   : > { %v900_v47 = vpop.f32.mrb[4].mxu1 }
 0x457   : > { %v901_v48 = vadd.f32 %v900_v47, %v738_v40  ;;  %v1798_v49 = vpop.f32.mrb[5].mxu1 }
 0x458   : > { %v903_v50 = vpop.f32.mrb[6].mxu1 }
 0x459   : > { %v1799_v51 = vpop.f32.mrb[7].mxu1  ;;  %v906_v52 = vsel %vm744_vm4, %v901_v48, -inf }
 0x45a   : > { %907 = vmax.xlane.f32.xlu0 %v906_v52 }
 0x45e   : > { %v1019_v53 = vpop.f32.mrb[8].mxu1 }
 0x45f   : > { %v1020_v54 = vadd.f32 %v1019_v53, %v738_v40  ;;  %v1810_v55 = vpop.f32.mrb[9].mxu1 }
 0x460   : > { %v1022_v56 = vpop.f32.mrb[10].mxu1  ;;  %v2004_v55 = vld [vmem:[%s2734_s3] sm:$0xff]  }
 0x461   : > { %v1811_v57 = vpop.f32.mrb[11].mxu1  ;;  %v1025_v58 = vsel %vm744_vm4, %v1020_v54, -inf  ;;  %1831 = vmatpush3.bf16.msra.mxu1 %v2004_v55  ;;  %v2005_v56 = vld [vmem:[%s2734_s3 + $0x8] sm:$0xff]  }
 0x462   : > { %1026 = vmax.xlane.f32.xlu1 %v1025_v58  ;;  %1832 = vmatprep.subr.bf16.mxu1 %v2317_v9 }
 0x465   : > { %1833 = vmatpush3.bf16.msra.mxu1 %v2005_v56 }
 0x466   : > { %v1138_v59 = vpop.f32.mrb[12].mxu1  ;;  %1846 = vmatprep.subr.bf16.mxu1 %v2317_v9 }
 0x467   : > { %v1139_v60 = vadd.f32 %v1138_v59, %v738_v40  ;;  %v1822_v61 = vpop.f32.mrb[13].mxu1 }
 0x468   : > { %v1141_v62 = vpop.f32.mrb[14].mxu1 }
 0x469   : > { %v1823_v63 = vpop.f32.mrb[15].mxu1  ;;  %v1144_v0 = vsel %vm744_vm4, %v1139_v60, -inf }
 0x46a   : > { %1145 = vmax.xlane.f32.xlu0 %v1144_v0 }
 0x4df   : > { %v793_v1 = vpop.xlane.xlu1 %792 }
 0x4e0   : > { %v794_v2 = vsub.f32 %v786_v42, %v793_v1 }
 0x4e2   : > { %v795_v3 = vmul.f32 1.442695, %v794_v2 }
 0x4e4   : > { %2014 = vpow2.f32 %v795_v3 }
 0x4e7   : > { %v908_v4 = vpop.xlane.xlu0 %907 }
 0x4e8   : > { %v909_v5 = vsub.f32 %v901_v48, %v908_v4 }
 0x4ea   : > { %v910_v6 = vmul.f32 1.442695, %v909_v5 }
 0x4ec   : > { %2016 = vpow2.f32 %v910_v6  ;;  %v1720_v6 = vld [vmem:[%s519_s2] ss:$0 sm:$0xff] }
 0x4ee   : > { %v2015_v7 = vpop.eup %2014 }
 0x4ef   : > { %v797_v8 = vsel %vm744_vm4, %v2015_v7, 0.0  ;;  %v1027_v17 = vpop.xlane.xlu1 %1026 }
 0x4f0   : > { %798 = vadd.xlane.f32.xlu1 %v797_v8  ;;  %v1028_v18 = vsub.f32 %v1020_v54, %v1027_v17 }
 0x4f2   : > { %v1029_v20 = vmul.f32 1.442695, %v1028_v18 }
 0x4f6   : > { %v2017_v10 = vpop.eup %2016 }
 0x4f7   : > { %v1146_v11 = vpop.xlane.xlu0 %1145  ;;  %v912_v12 = vsel %vm744_vm4, %v2017_v10, 0.0 }
 0x4f8   : > { %v1147_v13 = vsub.f32 %v1139_v60, %v1146_v11  ;;  %913 = vadd.xlane.f32.xlu0 %v912_v12 }
 0x4fa   : > { %v1148_v14 = vmul.f32 1.442695, %v1147_v13 }
 0x4fc   : > { %2018 = vpow2.f32 %v1148_v14 }
 0x4fd   : > { %2020 = vpow2.f32 %v1029_v20 }
 0x501   : > { %803 = vrot.lane.b32.xlu1 %v2782_v28, %s2326_s9 }
 0x506   : > { %v2019_v15 = vpop.eup %2018 }
 0x507   : > { %v1150_v16 = vsel %vm744_vm4, %v2019_v15, 0.0  ;;  %v2021_v21 = vpop.eup %2020 }
 0x508   : > { %1151 = vadd.xlane.f32.xlu0 %v1150_v16  ;;  %v1031_v22 = vsel %vm744_vm4, %v2021_v21, 0.0 }
 0x51e   : > { %918 = vrot.lane.b32.xlu0 %v2782_v28, %s2327_s24 }
 0x525   : > { %1032 = vadd.xlane.f32.xlu1 %v1031_v22  ;;  %v2007_v22 = vld [vmem:[%s2739_s22 + $0x8] sm:$0xff]  }
 0x536   : > { %1037 = vrot.lane.b32.xlu1 %v2782_v28, %s2328_s12 }
 0x53a   : > { %1156 = vrot.lane.b32.xlu1 %v2782_v28, %s2329_s26 }
 0x57d   : > { %v799_v23 = vpop.xlane.xlu1 %798 }
 0x57e   : > { %2022 = vrcp.f32 %v799_v23  ;;  %v2009_v23 = vld [vmem:[%s2745_s7 + $0x8] sm:$0xff]  }
 0x581   : > { %v804_v24 = vpop.permute.xlu1 %803 }
 0x582   : > { %v810_v25 = vsel %vm808_vm5, %v804_v24, 0 }
 0x583   : > { %1789 = vmatpush3.bf16.msra.mxu0 %v810_v25 }
 0x584   : > { %1800 = vmatprep.subr.bf16.mxu0 %v2317_v9 }
 0x585   : > { %v914_v27 = vpop.xlane.xlu0 %913 }
 0x586   : > { %2024 = vrcp.f32 %v914_v27 }
 0x588   : > { %v2023_v26 = vpop.eup %2022 }
 0x589   : > { %v801_v29 = vmul.f32 %v2023_v26, %v2015_v7 }
 0x58b   : > { %v802_v30 = vpack.c.bf16 %v801_v29, %v801_v29  ;;  %v1724_v29 = vld [vmem:[%s2713_s30 + $0x2] ss:$0 sm:$0xff] }
 0x58d   : > { %1791 = vmatmul.mubr.msk.bf16.vlgmr.msra.gmra.mrb[4].mxu0 %vm744_vm4, %v802_v30 }
 0x58e   : > { %1802 = vmatprep.mubr.msk.bf16.mxu0 %vm2318_vm2, %v2317_v9 }
 0x590   : > { %v2025_v28 = vpop.eup %2024 }
 0x591   : > { %v916_v32 = vmul.f32 %v2025_v28, %v2017_v10  ;;  %v1725_v28 = vld [vmem:[%s2713_s30 + $0x3] ss:$0 sm:$0xff] }
 0x593   : > { %v917_v35 = vpack.c.bf16 %v916_v32, %v916_v32 }
 0x595   : > { %v1152_v31 = vpop.xlane.xlu0 %1151 }
 0x599   : > { %v919_v33 = vpop.permute.xlu0 %918 }
 0x59a   : > { %v924_v34 = vsel %vm808_vm5, %v919_v33, 0 }
 0x59b   : > { %1801 = vmatpush3.bf16.msra.mxu0 %v924_v34  ;;  %v2010_v34 = vld [vmem:[%s2745_s7 + $0x10] sm:$0xff]  }
 0x59c   : > { %1812 = vmatprep.subr.bf16.mxu0 %v2317_v9 }
 0x59e   : > { %1803 = vmatmul.mubr.msk.bf16.vlgmr.msra.gmra.mrb[8].mxu0 %vm744_vm4, %v917_v35  ;;  %v2011_v35 = vld [vmem:[%s2745_s7 + $0x18] sm:$0xff]  }
 0x59f   : > { %1814 = vmatprep.mubr.msk.bf16.mxu0 %vm2318_vm2, %v2317_v9 }
 0x5b2   : > { %v1033_v36 = vpop.xlane.xlu1 %1032 }
 0x5b3   : > { %2026 = vrcp.f32 %v1033_v36  ;;  %v1726_v36 = vld [vmem:[%s527_s20] ss:$0 sm:$0xff]  ;;  %s1470_s20 = sshll.u32 %s2753_s14, 4  ;;  %s2884_s20 = int_to_ptr.vmem [resolvable:$true] %s1470_s20 }
 0x5b4   : > { %2028 = vrcp.f32 %v1152_v31  ;;  %s2180_s18 = scalar_lea.vmem %s2884_s20, 128  ;;  %p2187_p4 = scmp.lt.s32.totalorder %s2884_s20, %s2185_s23 }
 0x5b5   : > { %p2181_p1 = scmp.ne.s32.totalorder %s2884_s20, %s2180_s18  ;;  %p2188_p12 = scmp.lt.s32.totalorder %s2186_s17, %s2180_s18 }
 0x5b6   : > { %v1038_v37 = vpop.permute.xlu1 %1037 }
 0x5b7   : > { %v1043_v38 = vsel %vm808_vm5, %v1038_v37, 0  ;;  %p2182_p7 = pnand %p2181_p1, %p3039_p10  ;;  %p2189_p0 = por %p2188_p12, %p2187_p4 }
 0x5b8   : > { %1813 = vmatpush3.bf16.msra.mxu0 %v1043_v38 }
 0x5b9   : > { %1824 = vmatprep.subr.bf16.mxu0 %v2317_v9  ;;  %p2183_p11 = pneg %p2182_p7 }
 0x5ba   : > { %v1157_v41 = vpop.permute.xlu1 %1156 }
 0x5bb   : > { %v1162_v44 = vsel %vm808_vm5, %v1157_v41, 0  ;;  %p2190_p3 = pnand %p2189_p0, %p2183_p11 }
 0x5bd   : > { %v2027_v39 = vpop.eup %2026 }
 0x5be   : > { %v1035_v40 = vmul.f32 %v2027_v39, %v2021_v21  ;;  %v2029_v43 = vpop.eup %2028  ;;  %v2006_v21 = vld [vmem:[%s2739_s22] sm:$0xff]   ;;  %s3035_s22 = sld [smem:[#allocation21_spill]] }
 0x5bf   : > { %v1154_v45 = vmul.f32 %v2029_v43, %v2019_v15 }
 0x5c0   : > { %v1036_v42 = vpack.c.bf16 %v1035_v40, %v1035_v40 }
 0x5c1   : > { %v1155_v46 = vpack.c.bf16 %v1154_v45, %v1154_v45 }
 0x5c2   : > { %1815 = vmatmul.mubr.msk.bf16.vlgmr.msra.gmra.mrb[12].mxu0 %vm744_vm4, %v1036_v42 }
 0x5c3   : > { %1825 = vmatpush3.bf16.msra.mxu0 %v1162_v44  ;;  %1826 = vmatprep.mubr.msk.bf16.mxu0 %vm2318_vm2, %v2317_v9 }
 0x5c4   : > { %1838 = vmatprep.subr.bf16.mxu0 %v2317_v9  ;;  %s1737_s13 = sshll.u32 %s3035_s22, 7 }
 0x5c5   : > { %s2882_s8 = scalar_lea.hbm %s3037_s5, %s1737_s13 }
 0x5ca   : > { %1827 = vmatmul.mubr.msk.bf16.vlgmr.msra.gmra.mrb[16].mxu0 %vm744_vm4, %v1155_v46 }
 0x5cb   : > { %1842 = vmatprep.mubr.msk.bf16.mxu0 %vm2318_vm2, %v2317_v9  ;;  %1839 = vmatpush3.bf16.msra.mxu0 %v2006_v21 }
 0x5cc   : > { %1840 = vmatprep.subr.bf16.mxu0 %v2317_v9 }
 0x5cf   : > { %1841 = vmatpush3.bf16.msra.mxu0 %v2007_v22 }
 0x660   : > { %v846_v47 = vpop.f32.mrb[4].mxu0 }
 0x661   : > { %852 = vst.msk [vmem:[#allocation3] sm:$0xff] %vm744_vm4, %v846_v47  ;;  %v1792_v48 = vpop.f32.mrb[5].mxu0 }
 0x662   : > { %v849_v49 = vpop.f32.mrb[6].mxu0 }
 0x663   : > { %v1793_v50 = vpop.f32.mrb[7].mxu0 }
 0x671   : > { %v960_v51 = vpop.f32.mrb[8].mxu0 }
 0x672   : > { %967 = vrot.lane.b32.xlu0 %v960_v51, %s2330_s11  ;;  %v1804_v52 = vpop.f32.mrb[9].mxu0 }
 0x673   : > { %v963_v53 = vpop.f32.mrb[10].mxu0 }
 0x674   : > { %v1805_v54 = vpop.f32.mrb[11].mxu0 }
 0x695   : > { %v1079_v57 = vpop.f32.mrb[12].mxu0 }
 0x696   : > { %1086 = vrot.lane.b32.xlu1 %v1079_v57, %s2331_s29  ;;  %v1816_v58 = vpop.f32.mrb[13].mxu0 }
 0x697   : > { %v1082_v59 = vpop.f32.mrb[14].mxu0 }
 0x698   : > { %v1817_v60 = vpop.f32.mrb[15].mxu0 }
 0x69d   : > { %v1198_v61 = vpop.f32.mrb[16].mxu0 }
 0x69e   : > { %1205 = vrot.lane.b32.xlu0 %v1198_v61, %s2332_s28  ;;  %v1828_v62 = vpop.f32.mrb[17].mxu0 }
 0x69f   : > { %v1201_v63 = vpop.f32.mrb[18].mxu0 }
 0x6a0   : > { %v1829_v0 = vpop.f32.mrb[19].mxu0 }
 0x6e4   : > { %v968_v1 = vpop.permute.xlu0 %967 }
 0x6e5   : > { %971 = vst.msk [vmem:[#allocation3] sm:$0xff] %vm970_vm6, %v968_v1 }
 0x708   : > { %v1087_v2 = vpop.permute.xlu1 %1086 }
 0x709   : > { %1090 = vst.msk [vmem:[#allocation3] sm:$0xff] %vm1089_vm7, %v1087_v2 }
 0x710   : > { %v1206_v3 = vpop.permute.xlu0 %1205 }
 0x711   : > { %1209 = vst.msk [vmem:[#allocation3] sm:$0xff] %vm1208_vm8, %v1206_v3 }
 0x718   : > { %v1210_v4 = vld [vmem:[#allocation3] sm:$0xff] }
 0x719   : > { %v1211_v5 = vpack.c.bf16 %v1210_v4, %v1210_v4 }
 0x71b   : > { %1835 = vmatmul.mubr.msk.bf16.vlgmr.msra.gmra.mrb[16].mxu1 %vm644_vm1, %v1211_v5 }
 0x71c   : > { %1854 = vmatprep.mubr.msk.bf16.mxu1 %vm2318_vm2, %v2317_v9 }
 0x7ee   : > { %v1272_v7 = vpop.f32.mrb[16].mxu1 }
 0x7ef   : > { %v1273_v8 = vadd.f32 %v1720_v6, %v1272_v7  ;;  %v1836_v10 = vpop.f32.mrb[17].mxu1 }
 0x7f0   : > { %v1275_v11 = vpop.f32.mrb[18].mxu1 }
 0x7f1   : > { %v1837_v12 = vpop.f32.mrb[19].mxu1  ;;  %v1278_v13 = vadd.f32 %v1273_v8, %v2770_v19  ;;  %v2008_v19 = vld [vmem:[%s2745_s7] sm:$0xff]  }
 0x7f2   : > { %1847 = vmatpush3.bf16.msra.mxu1 %v2008_v19 }
 0x7f3   : > { %v1279_v14 = vsel %vm644_vm1, %v1278_v13, 0.0  ;;  %1848 = vmatprep.subr.bf16.mxu1 %v2317_v9 }
 0x7f4   : > { %1280 = vadd.xlane.f32.xlu1 %v1279_v14 }
 0x7f6   : > { %1849 = vmatpush3.bf16.msra.mxu1 %v2009_v23 }
 0x7f7   : > { %1850 = vmatprep.subr.bf16.mxu1 %v2317_v9 }
 0x7fa   : > { %1851 = vmatpush3.bf16.msra.mxu1 %v2010_v34 }
 0x7fb   : > { %1852 = vmatprep.subr.bf16.mxu1 %v2317_v9  ;;  %v1730_v9 = vld [vmem:[%s630_s6] ss:$0 sm:$0xff]  ;;  %s1457_s6 = scalar_lea.sflag [#allocation6], %s3038_s10 }
 0x7fe   : > { %1853 = vmatpush3.bf16.msra.mxu1 %v2011_v35 }
 0x881   : > { %v1281_v15 = vpop.xlane.xlu1 %1280 }
 0x882   : > { %v1282_v16 = vmul.f32 0.03125, %v1281_v15 }
 0x884   : > { %v1283_v17 = vsub.f32 %v1278_v13, %v1282_v16 }
 0x886   : > { %v1284_v18 = vmul.f32 %v1283_v17, %v1283_v17 }
 0x888   : > { %v1285_v20 = vsel %vm644_vm1, %v1284_v18, 0.0 }
 0x889   : > { %1286 = vadd.xlane.f32.xlu0 %v1285_v20 }
 0x916   : > { %v1287_v24 = vpop.xlane.xlu0 %1286 }
 0x917   : > { %v1288_v25 = vmul.f32 0.03125, %v1287_v24 }
 0x919   : > { %v1289_v26 = vadd.f32 1e-12, %v1288_v25 }
 0x91b   : > { %2030 = vrsqrt.f32 %v1289_v26 }
 0x925   : > { %v2031_v27 = vpop.eup %2030 }
 0x926   : > { %v1291_v30 = vmul.f32 %v2031_v27, %v1283_v17 }
 0x928   : > { %v1296_v31 = vmul.f32 %v1724_v29, %v1291_v30 }
 0x92a   : > { %v1301_v32 = vadd.f32 %v1725_v28, %v1296_v31 }
 0x92c   : > { %v1302_v33 = vpack.c.bf16 %v1301_v32, %v1301_v32 }
 0x92e   : > { %1843 = vmatmul.mubr.msk.bf16.vlgmr.msra.gmra.mrb[20].mxu0 %vm644_vm1, %v1302_v33 }
 0xa01   : > { %v1363_v37 = vpop.f32.mrb[20].mxu0 }
 0xa02   : > { %v1364_v38 = vadd.f32 %v1726_v36, %v1363_v37  ;;  %v1844_v39 = vpop.f32.mrb[21].mxu0 }
 0xa03   : > { %v1366_v40 = vpop.f32.mrb[22].mxu0 }
 0xa04   : > { %v1369_v41 = vmax.f32 %v1364_v38, 0.0  ;;  %v1845_v42 = vpop.f32.mrb[23].mxu0 }
 0xa06   : > { %v1370_v43 = vpack.c.bf16 %v1369_v41, %v1369_v41 }
 0xa08   : > { %1855 = vmatmul.mubr.msk.bf16.vlgmr.msra.gmra.mrb[20].mxu1 %vm1410_vm9, %v1370_v43 }
 0xadb   : > { %v1448_v44 = vpop.f32.mrb[20].mxu1 }
 0xadc   : > { %v1449_v45 = vadd.f32 %v1730_v9, %v1448_v44  ;;  %v1856_v46 = vpop.f32.mrb[21].mxu1 }
 0xadd   : > { %v1451_v47 = vpop.f32.mrb[22].mxu1 }
 0xade   : > { %v1454_v48 = vadd.f32 %v1449_v45, %v1301_v32  ;;  %v1857_v49 = vpop.f32.mrb[23].mxu1 }
 0xae0   : > { %1455 = vst.msk [vmem:[%s2753_s14] sm:$0xff] %vm644_vm1, %v1454_v48 }
 0xae1   : > { %2193 = shalt.err (!%p2190_p3)
}
 0xae2   : > { %s2194_s14 = scalar_lea.hbm %s2882_s8, 128  ;;  %s2198_s15 = scalar_lea.hbm %s3037_s5, 256 }
 0xae3   : > { %p2195_p5 = scmp.ne.s32.totalorder %s2882_s8, %s2194_s14  ;;  %p2199_p8 = scmp.lt.u32.totalorder %s2882_s8, %s3037_s5 }
 0xae4   : > { %p2200_p6 = scmp.lt.u32.totalorder %s2198_s15, %s2194_s14  ;;  %p2202_p1 = scmp.lt.u32.totalorder %s2194_s14, %s2882_s8 }
 0xae5   : > { %p2196_p13 = pnand %p2195_p5, %p3039_p10 }
 0xae6   : > { %p2201_p9 = por %p2200_p6, %p2199_p8 }
 0xae7   : > { %p2197_p2 = pneg %p2196_p13 }
 0xae8   : > { %p2203_p7 = por %p2202_p1, %p2201_p9 }
 0xaea   : > { %p2204_p11 = pnand %p2203_p7, %p2197_p2 }
 0xaec   : > { %2207 = shalt.err (!%p2204_p11)
}
 0xaed   : > { %1870 = dma.vmem_to_hbm [thread:$0]  (%p3039_p10), %s2884_s20, 128, %s2882_s8, %s1457_s6  }
 0xaee PF: > { %s3040_s12 = sld [smem:[#allocation19_spill]]  ;;  %s3041_s26 = sld [smem:[#allocation28_spill]] }
 0xaef   : > { %p1896_p4 = scmp.ge.s32.totalorder %s2310_s27, 2 }
 0xaf4   : > { %s1482_s11 = sand.u32 1, %s3040_s12   ;;  %p3042_p12 = scmp.ne.s32.totalorder %s3041_s26, 0 }
 0xaf5   : > { %s1483_s29 = scalar_lea.sflag [#allocation6], %s1482_s11 }
 0xaf6   : > { %p1890_p0 = pnand %p1896_p4, %p3042_p12 }
 0xaf8   : > { %2265 = dma.done.wait (!%p1890_p0), %s1483_s29, 128  }
 0xaf9   : > { %2267 = vsyncadd (!%p1890_p0), %s1483_s29, 4294967168  ;;  %s28_s27 = sadd.s32 1, %s2310_s27   ;;  %s3043_s17 = sld [smem:[#allocation17_spill]] }
 0xafa   : > { %p25_p3 = scmp.ge.s32.totalorder %s28_s27, 6   ;;  %s3044_s18 = sld [smem:[#allocation18_spill]] }
 0xafb   : > { %s3045_s19 = sld [smem:[#allocation26_spill]]  ;;  %s3046_s0 = sld [smem:[#allocation20_spill]] }
 0xafc   : > { %s3047_s22 = sld [smem:[#allocation27_spill]]  ;;  %s3048_s23 = sld [smem:[#allocation22_spill]] }
 0xafd   : > { %s3049_s24 = sld [smem:[#allocation23_spill]]  ;;  %s3050_s25 = sld [smem:[#allocation24_spill]] }
 0xafe   : > { %s3051_s26 = sld [smem:[#allocation25_spill]]  ;;  %s3052_s20 = smov %s2286_s21 }
 0xaff   :  { %27 = sbr.rel (!%p25_p3) target bundleno = 22 (0x16), region = 168 }
 0xb01   : > { %s3053_s21 = smov %s3046_s0 }
 0xb06   :  { %1488 = vsyncpa [#allocation5], 1 }
 0xb07   :  { %1490 = vsyncpa [#allocation5 + $0x1], 1 }
 0xb08   :  { %1491 = vsyncpa [#allocation8], 1 }
 0xb09   :  { %1492 = vsyncpa [#allocation6], 1 }
 0xb0a   :  { %1494 = vsyncpa [#allocation6 + $0x1], 1 }

</bundles_post_ra>
